<compile_context>
chip_gen: v5e
topology: v5e:2x2
jax: 0.10.0
libtpu: 0.0.40
codegen_flags: <defaults>
</compile_context>

<pallas_src>
import functools

import jax
import jax.numpy as jnp
from jax.experimental import pallas as pl
from jax.experimental.pallas import tpu as pltpu

BN_EPS = 1e-5
LANE = 128                      # lane width: pad channel dims to this
VMEM_LIMIT = 64 * 1024 * 1024   # explicit scoped-VMEM limit


def _round_up(x, m):
    return ((x + m - 1) // m) * m


def _pick_hb(H, W, target_rows=512):
    """Rows of the image per im2col chunk (divisor of H, ~target patch rows)."""
    hb = max(1, min(H, target_rows // max(W, 1)))
    while H % hb:
        hb -= 1
    return hb


# ---------------------------------------------------------------------------
# Kernel 1: fused [prev-block BN+ReLU] -> zero-halo pad -> im2col ->
#           single fat-K conv matmul, plus per-program partial BN stats.
# Grid iterates over the batch dimension ("parallel": stats are per-program
# partials, so there is no shared accumulator).
# ---------------------------------------------------------------------------
def _conv_block_kernel(x_ref, scale_ref, shift_ref, w_ref, y_ref, stats_ref,
                       pad_ref, pm_ref, *,
                       H, W, Hp, Wp, KH, KW, dil, ph, pw, HB, fuse_bn_relu):
    # x_ref:     (1, H*W, CPin)       pre-BN activation (or raw input) of batch n
    # scale_ref: (1, CPin)            fused input-side BN scale  (unused block 0)
    # shift_ref: (1, CPin)            fused input-side BN shift  (unused block 0)
    # w_ref:     (KH*KW*CPin, CPout)  reshaped, channel-padded conv weights
    # y_ref:     (1, H*W, CPout)      pre-BN conv output (lane-dense)
    # stats_ref: (1, 2, CPout)        per-program partial [sum, sumsq]
    # pad_ref:   VMEM (Hp, Wp, CPin)  zero-halo buffer (replaces wrapper jnp.pad)
    # pm_ref:    VMEM (HB*W, KH*KW*CPin) im2col patch matrix for one row chunk
    CPin = x_ref.shape[-1]
    CPout = w_ref.shape[-1]

    a = x_ref[0]                                             # (H*W, CPin)
    if fuse_bn_relu:
        # Fused BatchNorm(previous block) + ReLU applied on the fly.
        a = jnp.maximum(a * scale_ref[...] + shift_ref[...], 0.0)

    # Zero only the halo border strips; the interior is fully overwritten
    # below, so a full memset of the padded buffer is unnecessary.  This is
    # done every program (no cross-program state), so it is megacore-safe.
    if ph > 0:
        pad_ref[0:ph, :, :] = jnp.zeros((ph, Wp, CPin), jnp.float32)
        pad_ref[ph + H:Hp, :, :] = jnp.zeros((ph, Wp, CPin), jnp.float32)
    if pw > 0:
        pad_ref[ph:ph + H, 0:pw, :] = jnp.zeros((H, pw, CPin), jnp.float32)
        pad_ref[ph:ph + H, pw + W:Wp, :] = jnp.zeros((H, pw, CPin), jnp.float32)
    pad_ref[ph:ph + H, pw:pw + W, :] = a.reshape(H, W, CPin)

    s0 = jnp.zeros((1, CPout), jnp.float32)
    s1 = jnp.zeros((1, CPout), jnp.float32)

    taps = [(i, j) for i in range(KH) for j in range(KW)]
    nchunks = H // HB
    for c in range(nchunks):
        h0 = c * HB
        # im2col: lane-aligned column stores (CPin is a multiple of 128).
        for t, (i, j) in enumerate(taps):
            patch = pad_ref[h0 + i * dil:h0 + i * dil + HB,
                            j * dil:j * dil + W, :]
            pm_ref[:, t * CPin:(t + 1) * CPin] = patch.reshape(HB * W, CPin)
        # Single fat-K matmul: (HB*W, KH*KW*CPin) x (KH*KW*CPin, CPout).
        y = jnp.dot(pm_ref[...], w_ref[...],
                    preferred_element_type=jnp.float32)
        y_ref[0, h0 * W:(h0 + HB) * W, :] = y
        s0 = s0 + y.sum(axis=0, keepdims=True)
        s1 = s1 + (y * y).sum(axis=0, keepdims=True)

    stats_ref[0, 0:1, :] = s0
    stats_ref[0, 1:2, :] = s1


def conv_block_pallas(a, scale, shift, w_mat, H, W, k, dilation, fuse_bn_relu):
    """a: (N, H*W, CPin), scale/shift: (1, CPin), w_mat: (k*k*CPin, CPout)."""
    N, HW, CPin = a.shape
    KKC, CPout = w_mat.shape
    ph = pw = dilation * (k - 1) // 2
    Hp, Wp = H + 2 * ph, W + 2 * pw
    HB = _pick_hb(H, W)

    kernel = functools.partial(
        _conv_block_kernel, H=H, W=W, Hp=Hp, Wp=Wp, KH=k, KW=k, dil=dilation,
        ph=ph, pw=pw, HB=HB, fuse_bn_relu=fuse_bn_relu)

    y, stats = pl.pallas_call(
        kernel,
        out_shape=(
            jax.ShapeDtypeStruct((N, HW, CPout), jnp.float32),
            jax.ShapeDtypeStruct((N, 2, CPout), jnp.float32),
        ),
        grid=(N,),
        in_specs=[
            pl.BlockSpec((1, HW, CPin), lambda n: (n, 0, 0)),
            pl.BlockSpec((1, CPin), lambda n: (0, 0)),
            pl.BlockSpec((1, CPin), lambda n: (0, 0)),
            pl.BlockSpec((KKC, CPout), lambda n: (0, 0)),
        ],
        out_specs=(
            pl.BlockSpec((1, HW, CPout), lambda n: (n, 0, 0)),
            pl.BlockSpec((1, 2, CPout), lambda n: (n, 0, 0)),
        ),
        scratch_shapes=[
            pltpu.VMEM((Hp, Wp, CPin), jnp.float32),
            pltpu.VMEM((HB * W, KKC), jnp.float32),
        ],
        compiler_params=pltpu.CompilerParams(
            dimension_semantics=("parallel",),
            vmem_limit_bytes=VMEM_LIMIT),
    )(a, scale, shift, w_mat)
    return y, stats


# ---------------------------------------------------------------------------
# Kernel 2: standalone BN+ReLU for the LAST block only (flattened 2-D,
# lane-dense channels, large row tiles, parallel grid).
# ---------------------------------------------------------------------------
def _bn_relu_kernel(y_ref, scale_ref, shift_ref, o_ref):
    o_ref[...] = jnp.maximum(
        y_ref[...] * scale_ref[...] + shift_ref[...], 0.0)


def bn_relu_pallas(y2d, scale, shift):
    total, CP = y2d.shape
    if total <= 4096:
        tm = total
    else:
        tm = next(c for c in (4096, 2048, 1024, 512, 256, 128, 64, 32, 16, 8, 1)
                  if total % c == 0)
    return pl.pallas_call(
        _bn_relu_kernel,
        out_shape=jax.ShapeDtypeStruct((total, CP), jnp.float32),
        grid=(total // tm,),
        in_specs=[
            pl.BlockSpec((tm, CP), lambda r: (r, 0)),
            pl.BlockSpec((1, CP), lambda r: (0, 0)),
            pl.BlockSpec((1, CP), lambda r: (0, 0)),
        ],
        out_specs=pl.BlockSpec((tm, CP), lambda r: (r, 0)),
        compiler_params=pltpu.CompilerParams(
            dimension_semantics=("parallel",),
            vmem_limit_bytes=VMEM_LIMIT),
    )(y2d, scale, shift)


# ---------------------------------------------------------------------------
# Parameters (StackConv, block_type='conv')
# ---------------------------------------------------------------------------
def init_stack_conv_params(key, in_channels, out_channels, conv_kwargs):
    assert conv_kwargs["block_type"] == "conv"
    num_conv = conv_kwargs["num_conv"]
    ks = list(conv_kwargs["kernel_size"])
    dil = list(conv_kwargs["dilation"])
    params = []
    cin = in_channels
    for i in range(num_conv):
        key, sub = jax.random.split(key)
        k = int(ks[i])
        w = 0.1 * jax.random.normal(
            sub, (k, k, cin, out_channels), dtype=jnp.float32)
        gamma = jnp.ones((out_channels,), jnp.float32)   # BatchNorm2d weight
        beta = jnp.zeros((out_channels,), jnp.float32)   # BatchNorm2d bias

        cpin = _round_up(cin, LANE)
        cpout = _round_up(out_channels, LANE)
        # Zero-pad Cin/Cout to lane-dense widths; reshape to matmul layout.
        w_p = jnp.pad(w, ((0, 0), (0, 0),
                          (0, cpin - cin), (0, cpout - out_channels)))
        w_mat = w_p.reshape(k * k * cpin, cpout)
        gamma_p = jnp.pad(gamma, (0, cpout - out_channels), constant_values=1.0)
        beta_p = jnp.pad(beta, (0, cpout - out_channels))
        params.append({
            "w_mat": w_mat, "gamma_p": gamma_p, "beta_p": beta_p,
            "k": k, "dilation": int(dil[i]), "out_channels": out_channels,
        })
        cin = out_channels
    return params


# ---------------------------------------------------------------------------
# Forward
# ---------------------------------------------------------------------------
def stack_conv_forward(params, x_nchw):
    # NCHW (PyTorch) -> NHWC (lane-dense kernel layout)
    x = jnp.transpose(x_nchw, (0, 2, 3, 1)).astype(jnp.float32)
    N, H, W, Cin = x.shape
    cpin = _round_up(Cin, LANE)
    # Channel-pad + flatten spatially: (N, H*W, CPin).
    a = jnp.pad(x, ((0, 0), (0, 0), (0, 0), (0, cpin - Cin))
                ).reshape(N, H * W, cpin)

    # Block 0 has no input-side BN/ReLU: pass dummies and skip the transform
    # inside the kernel (fuse_bn_relu=False).
    scale = jnp.ones((1, cpin), jnp.float32)
    shift = jnp.zeros((1, cpin), jnp.float32)
    fuse_bn_relu = False

    count = float(N * H * W)
    for p in params:
        y, stats = conv_block_pallas(
            a, scale, shift, p["w_mat"], H, W, p["k"], p["dilation"],
            fuse_bn_relu)
        # Reduce per-program partial stats -> BN scale/shift for this block.
        s = stats.sum(axis=0)                       # (2, CPout)
        mean = s[0] / count
        # Single-pass E[x^2]-E[x]^2 (clamped); may differ slightly from
        # PyTorch's two-pass variance for large-mean activations.
        var = jnp.maximum(s[1] / count - mean * mean, 0.0)
        inv_std = jax.lax.rsqrt(var + BN_EPS)
        scale = (p["gamma_p"] * inv_std).reshape(1, -1)
        shift = (p["beta_p"] - mean * p["gamma_p"] * inv_std).reshape(1, -1)
        a = y                                        # pre-BN output of block
        fuse_bn_relu = True                          # next block fuses BN+ReLU

    # Last block's BN+ReLU has no consumer conv -> standalone fused pass.
    cpout = a.shape[-1]
    out = bn_relu_pallas(a.reshape(N * H * W, cpout), scale, shift)
    out = out.reshape(N, H, W, cpout)[..., :params[-1]["out_channels"]]
    # NHWC -> NCHW to match the PyTorch output convention
    return jnp.transpose(out, (0, 3, 1, 2))


if __name__ == "__main__":
    key = jax.random.PRNGKey(0)
    kp, kx = jax.random.split(key)

    in_channels, out_channels = 4, 8
    conv_kwargs = {
        "block_type": "conv",
        "num_conv": 2,
        "kernel_size": [3, 3],
        "dilation": [1, 1],
    }
    params = init_stack_conv_params(kp, in_channels, out_channels, conv_kwargs)

    x = jax.random.normal(kx, (2, in_channels, 16, 16), dtype=jnp.float32)

    out = stack_conv_forward(params, x)
    jax.block_until_ready(out)

    assert out.shape == (2, out_channels, 16, 16)
    assert bool(jnp.all(out >= 0.0))  # ReLU output is non-negative
    print("KERNEL_OK")
</pallas_src>

<mosaic_0001>
module attributes {stable_mosaic.version = 11 : i64} {
  func.func @_conv_block_kernel(%arg0: i32, %arg1: memref<1x256x128xf32, #tpu.memory_space<vmem>>, %arg2: memref<1x128xf32, #tpu.memory_space<vmem>>, %arg3: memref<1x128xf32, #tpu.memory_space<vmem>>, %arg4: memref<1152x128xf32, #tpu.memory_space<vmem>>, %arg5: memref<1x256x128xf32, #tpu.memory_space<vmem>>, %arg6: memref<1x2x128xf32, #tpu.memory_space<vmem>>, %arg7: memref<18x18x128xf32, #tpu.memory_space<vmem>>, %arg8: memref<256x1152xf32, #tpu.memory_space<vmem>>) attributes {dimension_semantics = [#tpu.dimension_semantics<parallel>], iteration_bounds = array<i64: 2>, scalar_prefetch = 0 : i64, scratch_operands = 2 : i64, tpu.core_type = #tpu.core_type<tc>, window_params = [{transform_indices = @transform_0, window_bounds = array<i64: 1, 256, 128>}, {pipeline_mode = #tpu.pipeline_mode<synchronous>, transform_indices = @transform_1, window_bounds = array<i64: 1, 128>}, {pipeline_mode = #tpu.pipeline_mode<synchronous>, transform_indices = @transform_2, window_bounds = array<i64: 1, 128>}, {pipeline_mode = #tpu.pipeline_mode<synchronous>, transform_indices = @transform_3, window_bounds = array<i64: 1152, 128>}, {transform_indices = @transform_4, window_bounds = array<i64: 1, 256, 128>}, {transform_indices = @transform_5, window_bounds = array<i64: 1, 2, 128>}]} {
    %c0 = arith.constant 0 : index
    %c0_0 = arith.constant 0 : index
    %c0_1 = arith.constant 0 : index
    %0 = vector.load %arg1[%c0, %c0_0, %c0_1] : memref<1x256x128xf32, #tpu.memory_space<vmem>>, vector<1x256x128xf32>
    %1 = vector.shape_cast %0 : vector<1x256x128xf32> to vector<256x128xf32>
    %cst = arith.constant 0.000000e+00 : f32
    %2 = vector.broadcast %cst : f32 to vector<1x18x128xf32>
    %c0_2 = arith.constant 0 : index
    %c0_3 = arith.constant 0 : index
    %c0_4 = arith.constant 0 : index
    %3 = vector.load %arg7[%c0_2, %c0_3, %c0_4] : memref<18x18x128xf32, #tpu.memory_space<vmem>>, vector<1x18x128xf32>
    tpu.vector_store %arg7[%c0_2, %c0_3, %c0_4], %2 {strides = array<i32>} : memref<18x18x128xf32, #tpu.memory_space<vmem>>, vector<1x18x128xf32>,
    %cst_5 = arith.constant 0.000000e+00 : f32
    %4 = vector.broadcast %cst_5 : f32 to vector<1x18x128xf32>
    %c17 = arith.constant 17 : index
    %c0_6 = arith.constant 0 : index
    %c0_7 = arith.constant 0 : index
    %5 = vector.load %arg7[%c17, %c0_6, %c0_7] : memref<18x18x128xf32, #tpu.memory_space<vmem>>, vector<1x18x128xf32>
    tpu.vector_store %arg7[%c17, %c0_6, %c0_7], %4 {strides = array<i32>} : memref<18x18x128xf32, #tpu.memory_space<vmem>>, vector<1x18x128xf32>,
    %cst_8 = arith.constant 0.000000e+00 : f32
    %6 = vector.broadcast %cst_8 : f32 to vector<16x1x128xf32>
    %c1 = arith.constant 1 : index
    %c0_9 = arith.constant 0 : index
    %c0_10 = arith.constant 0 : index
    %7 = vector.load %arg7[%c1, %c0_9, %c0_10] : memref<18x18x128xf32, #tpu.memory_space<vmem>>, vector<16x1x128xf32>
    tpu.vector_store %arg7[%c1, %c0_9, %c0_10], %6 {strides = array<i32>} : memref<18x18x128xf32, #tpu.memory_space<vmem>>, vector<16x1x128xf32>,
    %cst_11 = arith.constant 0.000000e+00 : f32
    %8 = vector.broadcast %cst_11 : f32 to vector<16x1x128xf32>
    %c1_12 = arith.constant 1 : index
    %c17_13 = arith.constant 17 : index
    %c0_14 = arith.constant 0 : index
    %9 = vector.load %arg7[%c1_12, %c17_13, %c0_14] : memref<18x18x128xf32, #tpu.memory_space<vmem>>, vector<16x1x128xf32>
    tpu.vector_store %arg7[%c1_12, %c17_13, %c0_14], %8 {strides = array<i32>} : memref<18x18x128xf32, #tpu.memory_space<vmem>>, vector<16x1x128xf32>,
    %10 = vector.shape_cast %1 : vector<256x128xf32> to vector<16x16x128xf32>
    %c1_15 = arith.constant 1 : index
    %c1_16 = arith.constant 1 : index
    %c0_17 = arith.constant 0 : index
    %11 = vector.load %arg7[%c1_15, %c1_16, %c0_17] : memref<18x18x128xf32, #tpu.memory_space<vmem>>, vector<16x16x128xf32>
    tpu.vector_store %arg7[%c1_15, %c1_16, %c0_17], %10 {strides = array<i32>} : memref<18x18x128xf32, #tpu.memory_space<vmem>>, vector<16x16x128xf32>,
    %cst_18 = arith.constant 0.000000e+00 : f32
    %12 = vector.broadcast %cst_18 : f32 to vector<1x128xf32>
    %cst_19 = arith.constant 0.000000e+00 : f32
    %13 = vector.broadcast %cst_19 : f32 to vector<1x128xf32>
    %c0_20 = arith.constant 0 : index
    %c0_21 = arith.constant 0 : index
    %c0_22 = arith.constant 0 : index
    %14 = vector.load %arg7[%c0_20, %c0_21, %c0_22] : memref<18x18x128xf32, #tpu.memory_space<vmem>>, vector<16x16x128xf32>
    %15 = vector.shape_cast %14 : vector<16x16x128xf32> to vector<256x128xf32>
    %c0_23 = arith.constant 0 : index
    %c0_24 = arith.constant 0 : index
    %16 = vector.load %arg8[%c0_23, %c0_24] : memref<256x1152xf32, #tpu.memory_space<vmem>>, vector<256x128xf32>
    tpu.vector_store %arg8[%c0_23, %c0_24], %15 {strides = array<i32>} : memref<256x1152xf32, #tpu.memory_space<vmem>>, vector<256x128xf32>,
    %c0_25 = arith.constant 0 : index
    %c1_26 = arith.constant 1 : index
    %c0_27 = arith.constant 0 : index
    %17 = vector.load %arg7[%c0_25, %c1_26, %c0_27] : memref<18x18x128xf32, #tpu.memory_space<vmem>>, vector<16x16x128xf32>
    %18 = vector.shape_cast %17 : vector<16x16x128xf32> to vector<256x128xf32>
    %c0_28 = arith.constant 0 : index
    %c128 = arith.constant 128 : index
    %19 = vector.load %arg8[%c0_28, %c128] : memref<256x1152xf32, #tpu.memory_space<vmem>>, vector<256x128xf32>
    tpu.vector_store %arg8[%c0_28, %c128], %18 {strides = array<i32>} : memref<256x1152xf32, #tpu.memory_space<vmem>>, vector<256x128xf32>,
    %c0_29 = arith.constant 0 : index
    %c2 = arith.constant 2 : index
    %c0_30 = arith.constant 0 : index
    %20 = vector.load %arg7[%c0_29, %c2, %c0_30] : memref<18x18x128xf32, #tpu.memory_space<vmem>>, vector<16x16x128xf32>
    %21 = vector.shape_cast %20 : vector<16x16x128xf32> to vector<256x128xf32>
    %c0_31 = arith.constant 0 : index
    %c256 = arith.constant 256 : index
    %22 = vector.load %arg8[%c0_31, %c256] : memref<256x1152xf32, #tpu.memory_space<vmem>>, vector<256x128xf32>
    tpu.vector_store %arg8[%c0_31, %c256], %21 {strides = array<i32>} : memref<256x1152xf32, #tpu.memory_space<vmem>>, vector<256x128xf32>,
    %c1_32 = arith.constant 1 : index
    %c0_33 = arith.constant 0 : index
    %c0_34 = arith.constant 0 : index
    %23 = vector.load %arg7[%c1_32, %c0_33, %c0_34] : memref<18x18x128xf32, #tpu.memory_space<vmem>>, vector<16x16x128xf32>
    %24 = vector.shape_cast %23 : vector<16x16x128xf32> to vector<256x128xf32>
    %c0_35 = arith.constant 0 : index
    %c384 = arith.constant 384 : index
    %25 = vector.load %arg8[%c0_35, %c384] : memref<256x1152xf32, #tpu.memory_space<vmem>>, vector<256x128xf32>
    tpu.vector_store %arg8[%c0_35, %c384], %24 {strides = array<i32>} : memref<256x1152xf32, #tpu.memory_space<vmem>>, vector<256x128xf32>,
    %c1_36 = arith.constant 1 : index
    %c1_37 = arith.constant 1 : index
    %c0_38 = arith.constant 0 : index
    %26 = vector.load %arg7[%c1_36, %c1_37, %c0_38] : memref<18x18x128xf32, #tpu.memory_space<vmem>>, vector<16x16x128xf32>
    %27 = vector.shape_cast %26 : vector<16x16x128xf32> to vector<256x128xf32>
    %c0_39 = arith.constant 0 : index
    %c512 = arith.constant 512 : index
    %28 = vector.load %arg8[%c0_39, %c512] : memref<256x1152xf32, #tpu.memory_space<vmem>>, vector<256x128xf32>
    tpu.vector_store %arg8[%c0_39, %c512], %27 {strides = array<i32>} : memref<256x1152xf32, #tpu.memory_space<vmem>>, vector<256x128xf32>,
    %c1_40 = arith.constant 1 : index
    %c2_41 = arith.constant 2 : index
    %c0_42 = arith.constant 0 : index
    %29 = vector.load %arg7[%c1_40, %c2_41, %c0_42] : memref<18x18x128xf32, #tpu.memory_space<vmem>>, vector<16x16x128xf32>
    %30 = vector.shape_cast %29 : vector<16x16x128xf32> to vector<256x128xf32>
    %c0_43 = arith.constant 0 : index
    %c640 = arith.constant 640 : index
    %31 = vector.load %arg8[%c0_43, %c640] : memref<256x1152xf32, #tpu.memory_space<vmem>>, vector<256x128xf32>
    tpu.vector_store %arg8[%c0_43, %c640], %30 {strides = array<i32>} : memref<256x1152xf32, #tpu.memory_space<vmem>>, vector<256x128xf32>,
    %c2_44 = arith.constant 2 : index
    %c0_45 = arith.constant 0 : index
    %c0_46 = arith.constant 0 : index
    %32 = vector.load %arg7[%c2_44, %c0_45, %c0_46] : memref<18x18x128xf32, #tpu.memory_space<vmem>>, vector<16x16x128xf32>
    %33 = vector.shape_cast %32 : vector<16x16x128xf32> to vector<256x128xf32>
    %c0_47 = arith.constant 0 : index
    %c768 = arith.constant 768 : index
    %34 = vector.load %arg8[%c0_47, %c768] : memref<256x1152xf32, #tpu.memory_space<vmem>>, vector<256x128xf32>
    tpu.vector_store %arg8[%c0_47, %c768], %33 {strides = array<i32>} : memref<256x1152xf32, #tpu.memory_space<vmem>>, vector<256x128xf32>,
    %c2_48 = arith.constant 2 : index
    %c1_49 = arith.constant 1 : index
    %c0_50 = arith.constant 0 : index
    %35 = vector.load %arg7[%c2_48, %c1_49, %c0_50] : memref<18x18x128xf32, #tpu.memory_space<vmem>>, vector<16x16x128xf32>
    %36 = vector.shape_cast %35 : vector<16x16x128xf32> to vector<256x128xf32>
    %c0_51 = arith.constant 0 : index
    %c896 = arith.constant 896 : index
    %37 = vector.load %arg8[%c0_51, %c896] : memref<256x1152xf32, #tpu.memory_space<vmem>>, vector<256x128xf32>
    tpu.vector_store %arg8[%c0_51, %c896], %36 {strides = array<i32>} : memref<256x1152xf32, #tpu.memory_space<vmem>>, vector<256x128xf32>,
    %c2_52 = arith.constant 2 : index
    %c2_53 = arith.constant 2 : index
    %c0_54 = arith.constant 0 : index
    %38 = vector.load %arg7[%c2_52, %c2_53, %c0_54] : memref<18x18x128xf32, #tpu.memory_space<vmem>>, vector<16x16x128xf32>
    %39 = vector.shape_cast %38 : vector<16x16x128xf32> to vector<256x128xf32>
    %c0_55 = arith.constant 0 : index
    %c1024 = arith.constant 1024 : index
    %40 = vector.load %arg8[%c0_55, %c1024] : memref<256x1152xf32, #tpu.memory_space<vmem>>, vector<256x128xf32>
    tpu.vector_store %arg8[%c0_55, %c1024], %39 {strides = array<i32>} : memref<256x1152xf32, #tpu.memory_space<vmem>>, vector<256x128xf32>,
    %c0_56 = arith.constant 0 : index
    %c0_57 = arith.constant 0 : index
    %41 = vector.load %arg8[%c0_56, %c0_57] : memref<256x1152xf32, #tpu.memory_space<vmem>>, vector<256x1152xf32>
    %c0_58 = arith.constant 0 : index
    %c0_59 = arith.constant 0 : index
    %42 = vector.load %arg4[%c0_58, %c0_59] : memref<1152x128xf32, #tpu.memory_space<vmem>>, vector<1152x128xf32>
    %cst_60 = arith.constant dense<0.000000e+00> : vector<256x128xf32>
    %43 = tpu.matmul %41, %42, %cst_60 {dimension_numbers = #tpu.dot_dimension_numbers<[1], [0], [0], [1], [0, 0, 1, 1], [], []>} : vector<256x1152xf32>, vector<1152x128xf32>, vector<256x128xf32> -> vector<256x128xf32>
    %c0_61 = arith.constant 0 : index
    %c0_62 = arith.constant 0 : index
    %c0_63 = arith.constant 0 : index
    %44 = vector.load %arg5[%c0_61, %c0_62, %c0_63] : memref<1x256x128xf32, #tpu.memory_space<vmem>>, vector<1x256x128xf32>
    %45 = vector.shape_cast %44 : vector<1x256x128xf32> to vector<256x128xf32>
    %46 = vector.shape_cast %43 : vector<256x128xf32> to vector<1x256x128xf32>
    tpu.vector_store %arg5[%c0_61, %c0_62, %c0_63], %46 {strides = array<i32>} : memref<1x256x128xf32, #tpu.memory_space<vmem>>, vector<1x256x128xf32>,
    %cst_64 = arith.constant dense<0.000000e+00> : vector<128xf32>
    %47 = vector.multi_reduction <add>, %43, %cst_64 [0] : vector<256x128xf32> to vector<128xf32>
    %48 = vector.shape_cast %47 : vector<128xf32> to vector<1x128xf32>
    %49 = arith.addf %12, %48 : vector<1x128xf32>
    %50 = arith.mulf %43, %43 : vector<256x128xf32>
    %cst_65 = arith.constant dense<0.000000e+00> : vector<128xf32>
    %51 = vector.multi_reduction <add>, %50, %cst_65 [0] : vector<256x128xf32> to vector<128xf32>
    %52 = vector.shape_cast %51 : vector<128xf32> to vector<1x128xf32>
    %53 = arith.addf %13, %52 : vector<1x128xf32>
    %c0_66 = arith.constant 0 : index
    %c0_67 = arith.constant 0 : index
    %c0_68 = arith.constant 0 : index
    %54 = vector.load %arg6[%c0_66, %c0_67, %c0_68] : memref<1x2x128xf32, #tpu.memory_space<vmem>>, vector<1x1x128xf32>
    %55 = vector.shape_cast %54 : vector<1x1x128xf32> to vector<1x128xf32>
    %56 = vector.shape_cast %49 : vector<1x128xf32> to vector<1x1x128xf32>
    tpu.vector_store %arg6[%c0_66, %c0_67, %c0_68], %56 {strides = array<i32>} : memref<1x2x128xf32, #tpu.memory_space<vmem>>, vector<1x1x128xf32>,
    %c0_69 = arith.constant 0 : index
    %c1_70 = arith.constant 1 : index
    %c0_71 = arith.constant 0 : index
    %57 = vector.load %arg6[%c0_69, %c1_70, %c0_71] : memref<1x2x128xf32, #tpu.memory_space<vmem>>, vector<1x1x128xf32>
    %58 = vector.shape_cast %57 : vector<1x1x128xf32> to vector<1x128xf32>
    %59 = vector.shape_cast %53 : vector<1x128xf32> to vector<1x1x128xf32>
    tpu.vector_store %arg6[%c0_69, %c1_70, %c0_71], %59 {strides = array<i32>} : memref<1x2x128xf32, #tpu.memory_space<vmem>>, vector<1x1x128xf32>,
    return
  }
  func.func @transform_0(%arg0: i32) -> (i32, i32, i32) {
    %c0_i32 = arith.constant 0 : i32
    %c0_i32_0 = arith.constant 0 : i32
    %c0_i32_1 = arith.constant 0 : i32
    return %arg0, %c0_i32, %c0_i32_0 : i32, i32, i32
  }
  func.func @transform_1(%arg0: i32) -> (i32, i32) {
    %c0_i32 = arith.constant 0 : i32
    %c0_i32_0 = arith.constant 0 : i32
    %c0_i32_1 = arith.constant 0 : i32
    return %c0_i32, %c0_i32_0 : i32, i32
  }
  func.func @transform_2(%arg0: i32) -> (i32, i32) {
    %c0_i32 = arith.constant 0 : i32
    %c0_i32_0 = arith.constant 0 : i32
    %c0_i32_1 = arith.constant 0 : i32
    return %c0_i32, %c0_i32_0 : i32, i32
  }
  func.func @transform_3(%arg0: i32) -> (i32, i32) {
    %c0_i32 = arith.constant 0 : i32
    %c0_i32_0 = arith.constant 0 : i32
    %c0_i32_1 = arith.constant 0 : i32
    return %c0_i32, %c0_i32_0 : i32, i32
  }
  func.func @transform_4(%arg0: i32) -> (i32, i32, i32) {
    %c0_i32 = arith.constant 0 : i32
    %c0_i32_0 = arith.constant 0 : i32
    %c0_i32_1 = arith.constant 0 : i32
    return %arg0, %c0_i32, %c0_i32_0 : i32, i32, i32
  }
  func.func @transform_5(%arg0: i32) -> (i32, i32, i32) {
    %c0_i32 = arith.constant 0 : i32
    %c0_i32_0 = arith.constant 0 : i32
    %c0_i32_1 = arith.constant 0 : i32
    return %arg0, %c0_i32, %c0_i32_0 : i32, i32, i32
  }
}

</mosaic_0001>

<bundles_post_ra>
// kernel: tpu_custom_call.1
= control target key start
LH: loop header
LB: loop body
LE: loop exit
PB: predicated region body
PF: predicated region fallthrough
CT: control target
= control target key end

     0   :  { %s3771_s0 = inlined_call_operand.hbm [shape: f32[2,256,128], index: 0, kind: input, shape index: {}]   ;;  %s3772_s1 = inlined_call_operand.hbm [shape: f32[1,128], index: 1, kind: input, shape index: {}]   ;;  %s3773_s2 = inlined_call_operand.vmem [shape: f32[1,128], index: 2, kind: input, shape index: {}]   ;;  %s3774_s3 = inlined_call_operand.hbm [shape: f32[1152,128], index: 3, kind: input, shape index: {}]   ;;  %s3775_s4 = inlined_call_operand.hbm [shape: f32[2,256,128], index: 4, kind: output, shape index: {0}]   ;;  %s3776_s5 = inlined_call_operand.hbm [shape: f32[2,2,128], index: 5, kind: output, shape index: {1}]  }
   0x1   :  { %3777 = sst [smem:[#allocation18_spill]] %s3772_s1 }
   0x2   :  { %3778 = sst [smem:[#allocation19_spill]] %s3774_s3 }
   0x3   :  { %11 = vsyncpa [#allocation5], 0 }
   0x4   :  { %13 = vsyncpa [#allocation5 + $0x1], 0 }
   0x5   :  { %14 = vsyncpa [#allocation8], 0 }
   0x6   :  { %15 = vsyncpa [#allocation6], 0 }
   0x7   :  { %17 = vsyncpa [#allocation6 + $0x1], 0 }
   0x8   :  { %18 = vsyncpa [#allocation12], 0 }
   0x9   :  { %20 = vsyncpa [#allocation12 + $0x1], 0  ;;  %s3099_s18 = smov 0   ;;  %s3101_s19 = smov 0  }
   0xa   :  { %s3103_s2 = smov 0   ;;  %s3105_s20 = smov 0  }
   0xb LB: > { %s3120_s21 = sadd.s32 4294967295, %s3060_s20   ;;  %s2719_s22 = sadd.s32 4294967294, %s3060_s20   ;;  %s3060_s20 = sphi %s3105_s20, %s3793_s20   ;;  %s3056_s2 = sphi %s3103_s2, %s3792_s2   ;;  %s3052_s19 = sphi %s3101_s19, %s3791_s19   ;;  %s3048_s18 = sphi %s3099_s18, %s3790_s18  }
   0xc   : > { %s3124_s23 = sadd.s32 1, %s3060_s20   ;;  %s33_s24 = sadd.s32 1, %s3056_s2 }
   0xd   : > { %s30_s25 = ssub.s32 %s3060_s20, %s3124_s23  ;;  %p40_p0 = scmp.ne.s32.totalorder %s3056_s2, %s3052_s19 }
   0xe   : > { %p31_p1 = scmp.eq.s32.totalorder %s30_s25, 0  ;;  %p41_p2 = scmp.eq.s32.totalorder %s3060_s20, 0 }
   0xf   : > { %p46_p3 = scmp.ne.s32.totalorder %s3052_s19, %s3048_s18  ;;  %p47_p4 = scmp.eq.s32.totalorder %s3120_s21, 0 }
  0x10   : > { %s3136_s26 = scalar_select %p31_p1, %s3056_s2, %s33_s24  }
  0x11   : > { %p3138_p5 = por %p41_p2, %p40_p0  ;;  %p3144_p6 = por %p47_p4, %p46_p3 }
  0x12   : > { %3779 = sst [smem:[#allocation17_spill]] %s3136_s26  ;;  %p133_p7 = scmp.eq.s32.totalorder %s3120_s21, 1 }
  0x13   : > { %p139_p8 = scmp.eq.s32.totalorder %s2719_s22, 1  ;;  %p2720_p9 = scmp.ge.s32.totalorder %s3060_s20, 1 }
  0x14   : > { %p172_p10 = scmp.lt.s32.totalorder %s3060_s20, 3  ;;  %p3151_p11 = por %p133_p7, %p40_p0 }
  0x15   : > { %p3155_p12 = por %p139_p8, %p46_p3  ;;  %s3785_s1 = sld [smem:[#allocation18_spill]] }
  0x16   : > { %p3159_p13 = pnand %p2720_p9, %p172_p10  ;;  %s3062_s10 = smov [#allocation7]  }
  0x17   : > { %s186_s11 = sshll.u32 %s3062_s10, 4  ;;  %p2824_p3 = scmp.lt.s32.totalorder %s3060_s20, 2  ;;  %s187_s11 = int_to_ptr.vmem [resolvable:$true] %s186_s11 }
  0x18   : > { %p2804_p1 = pneg %p3159_p13  ;;  %s3786_s3 = sld [smem:[#allocation19_spill]] }
  0x19   : > { %p3177_p7 = pnand %p2824_p3, %p3138_p5  ;;  %s3063_s16 = smov [#allocation9]  }
  0x1a   : > { %p2805_p2 = pnand %p2804_p1, %p47_p4  ;;  %s200_s17 = sshll.u32 %s3063_s16, 4  ;;  %s201_s17 = int_to_ptr.vmem [resolvable:$true] %s200_s17 }
  0x1b   : > { %s184_s9 = sshll.u32 %s3785_s1, 4  ;;  %s214_s22 = sand.u32 1, %s3056_s2   ;;  %s185_s9 = int_to_ptr.hbm [resolvable:$true] %s184_s9 }
  0x1c   : > { %2807 = dma.hbm_to_vmem [thread:$0]  (!%p2805_p2), %s185_s9, 16, %s187_s11, [#allocation8]  }
  0x1d   : > { %s3064_s24 = smov 128   ;;  %s3065_s25 = smov 8  }
  0x1e   : > { %s198_s14 = sshll.u32 %s3786_s3, 4  ;;  %s2724_s7 = sshll.u32 %s214_s22, 8  ;;  %s199_s14 = int_to_ptr.hbm [resolvable:$true] %s198_s14 }
  0x1f   : > { %2810 = dma.hbm_to_vmem [thread:$0]  (!%p2805_p2), %s199_s14, 18432, %s201_s17, [#allocation8], %s3064_s24, %s3064_s24, %s3065_s25  }
  0x20   : > { %s2740_s8 = sshll.u32 %s3060_s20, 8  ;;  %s218_s9 = scalar_lea.vmem [#allocation4], %s2724_s7 }
  0x21   : > { %s223_s13 = scalar_lea.hbm %s3771_s0, %s2740_s8  ;;  %s226_s27 = sshll.u32 %s218_s9, 4  ;;  %s227_s27 = int_to_ptr.vmem [resolvable:$true] %s226_s27 }
  0x22   : > { %s224_s11 = sshll.u32 %s223_s13, 4  ;;  %s215_s1 = scalar_lea.sflag [#allocation5], %s214_s22  ;;  %s225_s11 = int_to_ptr.hbm [resolvable:$true] %s224_s11 }
  0x23   : > { %s2928_s3 = sshra.s32 %s225_s11, 4  ;;  %p2932_p8 = pneg %p3177_p7  ;;  %s2929_s3 = int_to_ptr.hbm [resolvable:$true] %s2928_s3 }
  0x24   : > { %s2930_s16 = scalar_lea.hbm %s2929_s3, 256  ;;  %s2935_s26 = scalar_lea.hbm %s3771_s0, 512 }
  0x25   : > { %p2931_p5 = scmp.ne.s32.totalorder %s2929_s3, %s2930_s16  ;;  %p2936_p1 = scmp.lt.s32.totalorder %s2929_s3, %s3771_s0 }
  0x26   : > { %p2937_p2 = scmp.lt.s32.totalorder %s2935_s26, %s2930_s16 }
  0x27   : > { %p2933_p9 = pnand %p2932_p8, %p2931_p5 }
  0x28   : > { %p2938_p3 = por %p2937_p2, %p2936_p1 }
  0x29   : > { %p2934_p10 = pneg %p2933_p9 }
  0x2b   : > { %p2939_p0 = pnand %p2938_p3, %p2934_p10 }
  0x2d   : > { %2942 = shalt.err (!%p2939_p0)
}
  0x2e   : > { %2814 = dma.hbm_to_vmem [thread:$0]  (!%p3177_p7), %s225_s11, 4096, %s227_s27, %s215_s1, %s3064_s24, %s3064_s24, %s3065_s25  }
  0x2f   : > { %238 = sbr.rel (%p3159_p13) target bundleno = 828 (0x33c), region = 36  ;;  %s3199_s22 = sand.u32 (!%p3159_p13), 1, %s3052_s19  }
  0x30   : > { %s2728_s7 = sshll.u32 (!%p3159_p13), %s3199_s22, 8  ;;  %s241_s12 = scalar_lea.sflag (!%p3159_p13), [#allocation5], %s3199_s22 }
  0x31   : > { %s3205_s3 = scalar_lea.vmem (!%p3159_p13), [#allocation4], %s2728_s7 }
  0x34   : > { %3031 = dma.done.wait (%p3144_p6), %s241_s12, 4096  }
  0x35   : > { %3033 = vsyncadd (%p3144_p6), %s241_s12, 4294963200 }
  0x36   : > { %3035 = dma.done.wait (%p47_p4), [#allocation8], 18448  }
  0x37   : > { %3037 = vsyncadd (%p47_p4), [#allocation8], 4294948848  ;;  %v3066_v0 = vmov 0.0   ;;  %v1271_v1 = vld [vmem:[#allocation9 + $0x78] sm:$0xff]  ;;  %v1270_v2 = vld [vmem:[#allocation9 + $0x70] sm:$0xff]  ;;  %s3657_s1 = scalar_lea.vmem [#allocation10], %s2728_s7 }
  0x38   : > { %330 = vst [vmem:[#allocation2 + $0x60] sm:$0x1] %v3066_v0  ;;  %2742 = vmatpush.msra.mxu1 %v1271_v1  ;;  %2743 = vmatpush.msra.mxu2 %v1271_v1  ;;  %v1269_v3 = vld [vmem:[#allocation9 + $0x68] sm:$0xff]  ;;  %v1268_v4 = vld [vmem:[#allocation9 + $0x60] sm:$0xff]  ;;  %v1267_v6 = vld [vmem:[#allocation9 + $0x58] sm:$0xff]  ;;  %s2741_s26 = sshll.u32 %s3120_s21, 8 }
  0x39   : > { %319 = vst [vmem:[#allocation2] sm:$0xff] %v3066_v0  ;;  %2744 = vmatpush.msra.mxu3 %v1271_v1  ;;  %1400 = vmatpush.msra.mxu0 %v1271_v1  ;;  %v3227_v5 = vld [vmem:[%s3205_s3 + $0x30] sm:$0xff]  ;;  %v1264_v9 = vld [vmem:[#allocation9 + $0x40] sm:$0xff]  ;;  %v1263_v10 = vld [vmem:[#allocation9 + $0x38] sm:$0xff]  ;;  %s2576_s15 = scalar_lea.hbm %s3775_s4, %s2741_s26  ;;  %s2577_s24 = sshll.u32 %s3657_s1, 4  ;;  %s2578_s24 = int_to_ptr.vmem [resolvable:$true] %s2577_s24 }
  0x3a   : > { %320 = vst [vmem:[#allocation2 + $0x8] sm:$0xff] %v3066_v0  ;;  %2745 = vmatpush.msra.mxu1 %v1270_v2  ;;  %2746 = vmatpush.msra.mxu2 %v1270_v2  ;;  %v1266_v7 = vld [vmem:[#allocation9 + $0x50] sm:$0xff]  ;;  %v1265_v8 = vld [vmem:[#allocation9 + $0x48] sm:$0xff]  ;;  %v1260_v13 = vld [vmem:[#allocation9 + $0x20] sm:$0xff]  ;;  %s2579_s25 = sshll.u32 %s2576_s15, 4  ;;  %s2560_s13 = scalar_lea.sflag [#allocation6], %s3199_s22  ;;  %s2580_s25 = int_to_ptr.hbm [resolvable:$true] %s2579_s25 }
  0x3b   : > { %321 = vst [vmem:[#allocation2 + $0x10] sm:$0x3] %v3066_v0  ;;  %2747 = vmatpush.msra.mxu3 %v1270_v2  ;;  %1401 = vmatpush.msra.mxu0 %v1270_v2  ;;  %v1262_v11 = vld [vmem:[#allocation9 + $0x30] sm:$0xff]  ;;  %v1261_v12 = vld [vmem:[#allocation9 + $0x28] sm:$0xff]  ;;  %v1259_v14 = vld [vmem:[#allocation9 + $0x18] sm:$0xff]  ;;  %s2972_s9 = sshra.s32 %s2580_s25, 4  ;;  %s2973_s9 = int_to_ptr.hbm [resolvable:$true] %s2972_s9 }
  0x3c   : > { %323 = vst [vmem:[#allocation2 + $0x198] sm:$0xff] %v3066_v0  ;;  %2748 = vmatpush.msra.mxu1 %v1269_v3  ;;  %2749 = vmatpush.msra.mxu2 %v1269_v3  ;;  %v1258_v15 = vld [vmem:[#allocation9 + $0x10] sm:$0xff]  ;;  %v1257_v16 = vld [vmem:[#allocation9 + $0x8] sm:$0xff]  ;;  %v1256_v17 = vld [vmem:[#allocation9] sm:$0xff]  ;;  %s2974_s27 = scalar_lea.hbm %s2973_s9, 256  ;;  %s2978_s14 = scalar_lea.hbm %s3775_s4, 512 }
  0x3d   : > { %324 = vst [vmem:[#allocation2 + $0x1a0] sm:$0xff] %v3066_v0  ;;  %2750 = vmatpush.msra.mxu3 %v1269_v3  ;;  %1402 = vmatpush.msra.mxu0 %v1269_v3  ;;  %v1303_v19 = vld [vmem:[#allocation9 + $0x178] sm:$0xff]  ;;  %v3258_v20 = vld [vmem:[%s3205_s3 + $0x70] sm:$0xff]  ;;  %v1300_v35 = vld [vmem:[#allocation9 + $0x160] sm:$0xff]  ;;  %p2975_p4 = scmp.ne.s32.totalorder %s2973_s9, %s2974_s27  ;;  %p2979_p0 = scmp.lt.s32.totalorder %s2973_s9, %s3775_s4 }
  0x3e   : > { %325 = vst [vmem:[#allocation2 + $0x1a8] sm:$0x3] %v3066_v0  ;;  %2751 = vmatpush.msra.mxu1 %v1268_v4  ;;  %2752 = vmatpush.msra.mxu2 %v1268_v4  ;;  %v1287_v21 = vld [vmem:[#allocation9 + $0xf8] sm:$0xff]  ;;  %v309_v22 = vld [vmem:[%s3205_s3 + $0xb0] sm:$0xff]  ;;  %v1284_v37 = vld [vmem:[#allocation9 + $0xe0] sm:$0xff]  ;;  %p2980_p7 = scmp.lt.s32.totalorder %s2978_s14, %s2974_s27 }
  0x3f   : > { %327 = vst [vmem:[#allocation2 + $0x18] sm:$0x1] %v3066_v0  ;;  %2753 = vmatpush.msra.mxu3 %v1268_v4  ;;  %1403 = vmatpush.msra.mxu0 %v1268_v4  ;;  %v1319_v23 = vld [vmem:[#allocation9 + $0x1f8] sm:$0xff]  ;;  %v1302_v24 = vld [vmem:[#allocation9 + $0x170] sm:$0xff]  ;;  %v1301_v29 = vld [vmem:[#allocation9 + $0x168] sm:$0xff]  ;;  %p2976_p6 = pnand %p2975_p4, %p3151_p11 }
  0x40   : > { %328 = vst [vmem:[#allocation2 + $0x30] sm:$0x1] %v3066_v0  ;;  %2754 = vmatpush.msra.mxu1 %v1267_v6  ;;  %2755 = vmatpush.msra.mxu2 %v1267_v6  ;;  %v3265_v25 = vld [vmem:[%s3205_s3 + $0x38] sm:$0xff]  ;;  %v1285_v31 = vld [vmem:[#allocation9 + $0xe8] sm:$0xff]  ;;  %v3274_v34 = vld [vmem:[%s3205_s3 + $0x40] sm:$0xff]  ;;  %p2981_p5 = por %p2980_p7, %p2979_p0 }
  0x41   : > { %329 = vst [vmem:[#allocation2 + $0x48] sm:$0x1] %v3066_v0  ;;  %2756 = vmatpush.msra.mxu3 %v1267_v6  ;;  %1404 = vmatpush.msra.mxu0 %v1267_v6  ;;  %v1286_v26 = vld [vmem:[#allocation9 + $0xf0] sm:$0xff]  ;;  %v1317_v32 = vld [vmem:[#allocation9 + $0x1e8] sm:$0xff]  ;;  %v1335_v33 = vld [vmem:[#allocation9 + $0x278] sm:$0xff]  ;;  %p2977_p13 = pneg %p2976_p6 }
  0x42   : > { %331 = vst [vmem:[#allocation2 + $0x78] sm:$0x1] %v3066_v0  ;;  %2757 = vmatpush.msra.mxu1 %v1266_v7  ;;  %2758 = vmatpush.msra.mxu2 %v1266_v7  ;;  %v1318_v27 = vld [vmem:[#allocation9 + $0x1f0] sm:$0xff]  ;;  %v3278_v36 = vld [vmem:[%s3205_s3 + $0x80] sm:$0xff]  ;;  %v3284_v42 = vld [vmem:[%s3205_s3 + $0x48] sm:$0xff] }
  0x43   : > { %332 = vst [vmem:[#allocation2 + $0x90] sm:$0x1] %v3066_v0  ;;  %2759 = vmatpush.msra.mxu3 %v1266_v7  ;;  %1405 = vmatpush.msra.mxu0 %v1266_v7  ;;  %v3269_v28 = vld [vmem:[%s3205_s3 + $0x78] sm:$0xff]  ;;  %v1316_v38 = vld [vmem:[#allocation9 + $0x1e0] sm:$0xff]  ;;  %v1333_v47 = vld [vmem:[#allocation9 + $0x268] sm:$0xff]  ;;  %p2982_p8 = pnand %p2981_p5, %p2977_p13 }
  0x44   : > { %365 = vst [vmem:[#allocation2 + $0x61] sm:$0xff] %v3227_v5  ;;  %2760 = vmatpush.msra.mxu1 %v1265_v8  ;;  %2761 = vmatpush.msra.mxu2 %v1265_v8  ;;  %v310_v30 = vld [vmem:[%s3205_s3 + $0xb8] sm:$0xff]  ;;  %v311_v40 = vld [vmem:[%s3205_s3 + $0xc0] sm:$0xff]  ;;  %v3288_v45 = vld [vmem:[%s3205_s3 + $0x88] sm:$0xff] }
  0x45   : > { %333 = vst [vmem:[#allocation2 + $0xa8] sm:$0x1] %v3066_v0  ;;  %2762 = vmatpush.msra.mxu3 %v1265_v8  ;;  %1406 = vmatpush.msra.mxu0 %v1265_v8  ;;  %v1334_v39 = vld [vmem:[#allocation9 + $0x270] sm:$0xff]  ;;  %v1283_v41 = vld [vmem:[#allocation9 + $0xd8] sm:$0xff]  ;;  %v312_v51 = vld [vmem:[%s3205_s3 + $0xc8] sm:$0xff] }
  0x46   : > { %334 = vst [vmem:[#allocation2 + $0xc0] sm:$0x1] %v3066_v0  ;;  %2763 = vmatpush.msra.mxu1 %v1264_v9  ;;  %2764 = vmatpush.msra.mxu2 %v1264_v9  ;;  %v1299_v43 = vld [vmem:[#allocation9 + $0x158] sm:$0xff]  ;;  %v1298_v50 = vld [vmem:[#allocation9 + $0x150] sm:$0xff]  ;;  %v1332_v55 = vld [vmem:[#allocation9 + $0x260] sm:$0xff] }
  0x47   : > { %335 = vst [vmem:[#allocation2 + $0xd8] sm:$0x1] %v3066_v0  ;;  %2765 = vmatpush.msra.mxu3 %v1264_v9  ;;  %1407 = vmatpush.msra.mxu0 %v1264_v9  ;;  %v1315_v44 = vld [vmem:[#allocation9 + $0x1d8] sm:$0xff]  ;;  %v1314_v53 = vld [vmem:[#allocation9 + $0x1d0] sm:$0xff]  ;;  %v1297_v58 = vld [vmem:[#allocation9 + $0x148] sm:$0xff] }
  0x48   : > { %336 = vst [vmem:[#allocation2 + $0xf0] sm:$0x1] %v3066_v0  ;;  %2766 = vmatpush.msra.mxu1 %v1263_v10  ;;  %2767 = vmatpush.msra.mxu2 %v1263_v10  ;;  %v3293_v48 = vld [vmem:[%s3205_s3] sm:$0xff]  ;;  %v3302_v54 = vld [vmem:[%s3205_s3 + $0x50] sm:$0xff]  ;;  %v3310_v60 = vld [vmem:[%s3205_s3 + $0x8] sm:$0xff] }
  0x49   : > { %337 = vst [vmem:[#allocation2 + $0x108] sm:$0x1] %v3066_v0  ;;  %2768 = vmatpush.msra.mxu3 %v1263_v10  ;;  %1408 = vmatpush.msra.mxu0 %v1263_v10  ;;  %v1282_v56 = vld [vmem:[#allocation9 + $0xd0] sm:$0xff]  ;;  %v1313_v59 = vld [vmem:[#allocation9 + $0x1c8] sm:$0xff]  ;;  %v1331_v61 = vld [vmem:[#allocation9 + $0x258] sm:$0xff] }
  0x4a   : > { %338 = vst [vmem:[#allocation2 + $0x120] sm:$0x1] %v3066_v0  ;;  %2769 = vmatpush.msra.mxu1 %v1262_v11  ;;  %2770 = vmatpush.msra.mxu2 %v1262_v11  ;;  %v3307_v57 = vld [vmem:[%s3205_s3 + $0x90] sm:$0xff]  ;;  %v1312_v2 = vld [vmem:[#allocation9 + $0x1c0] sm:$0xff]  ;;  %v3319_v3 = vld [vmem:[%s3205_s3 + $0x58] sm:$0xff] }
  0x4b   : > { %339 = vst [vmem:[#allocation2 + $0x138] sm:$0x1] %v3066_v0  ;;  %2771 = vmatpush.msra.mxu3 %v1262_v11  ;;  %1409 = vmatpush.msra.mxu0 %v1262_v11  ;;  %v3253_v18 = vld [vmem:[#allocation2 + $0x60] sm:$0xff]  ;;  %v3323_v6 = vld [vmem:[%s3205_s3 + $0x98] sm:$0xff]  ;;  %v1280_v10 = vld [vmem:[#allocation9 + $0xc0] sm:$0xff] }
  0x4c   : > { %340 = vst [vmem:[#allocation2 + $0x150] sm:$0x1] %v3066_v0  ;;  %2772 = vmatpush.msra.mxu1 %v1261_v12  ;;  %2773 = vmatpush.msra.mxu2 %v1261_v12  ;;  %v1281_v62 = vld [vmem:[#allocation9 + $0xc8] sm:$0xff]  ;;  %v1330_v8 = vld [vmem:[#allocation9 + $0x250] sm:$0xff]  ;;  %v1295_v11 = vld [vmem:[#allocation9 + $0x138] sm:$0xff] }
  0x4d   : > { %341 = vst [vmem:[#allocation2 + $0x168] sm:$0x1] %v3066_v0  ;;  %2774 = vmatpush.msra.mxu3 %v1261_v12  ;;  %1410 = vmatpush.msra.mxu0 %v1261_v12  ;;  %v313_v63 = vld [vmem:[%s3205_s3 + $0xd0] sm:$0xff]  ;;  %v314_v12 = vld [vmem:[%s3205_s3 + $0xd8] sm:$0xff] }
  0x4e   : > { %342 = vst [vmem:[#allocation2 + $0x180] sm:$0x1] %v3066_v0  ;;  %2775 = vmatpush.msra.mxu1 %v1260_v13  ;;  %2776 = vmatpush.msra.mxu2 %v1260_v13  ;;  %v3328_v9 = vld [vmem:[%s3205_s3 + $0x10] sm:$0xff] }
  0x4f   : > { %343 = vst [vmem:[#allocation2 + $0x29] sm:$0x1] %v3066_v0  ;;  %2777 = vmatpush.msra.mxu3 %v1260_v13  ;;  %1411 = vmatpush.msra.mxu0 %v1260_v13 }
  0x50   : > { %344 = vst [vmem:[#allocation2 + $0x41] sm:$0x1] %v3066_v0  ;;  %2778 = vmatpush.msra.mxu1 %v1259_v14  ;;  %2779 = vmatpush.msra.mxu2 %v1259_v14 }
  0x51   : > { %345 = vst [vmem:[#allocation2 + $0x59] sm:$0x1] %v3066_v0  ;;  %2780 = vmatpush.msra.mxu3 %v1259_v14  ;;  %1412 = vmatpush.msra.mxu0 %v1259_v14  ;;  %v1311_v14 = vld [vmem:[#allocation9 + $0x1b8] sm:$0xff] }
  0x52   : > { %346 = vst [vmem:[#allocation2 + $0x71] sm:$0x1] %v3066_v0  ;;  %2781 = vmatpush.msra.mxu1 %v1258_v15  ;;  %2782 = vmatpush.msra.mxu2 %v1258_v15 }
  0x53   : > { %347 = vst [vmem:[#allocation2 + $0x89] sm:$0x1] %v3066_v0  ;;  %2783 = vmatpush.msra.mxu3 %v1258_v15  ;;  %1413 = vmatpush.msra.mxu0 %v1258_v15  ;;  %v3337_v15 = vld [vmem:[%s3205_s3 + $0x60] sm:$0xff] }
  0x54   : > { %348 = vst [vmem:[#allocation2 + $0xa1] sm:$0x1] %v3066_v0  ;;  %2784 = vmatpush.msra.mxu1 %v1257_v16  ;;  %2785 = vmatpush.msra.mxu2 %v1257_v16 }
  0x55   : > { %349 = vst [vmem:[#allocation2 + $0xb9] sm:$0x1] %v3066_v0  ;;  %2786 = vmatpush.msra.mxu3 %v1257_v16  ;;  %1414 = vmatpush.msra.mxu0 %v1257_v16  ;;  %v1329_v16 = vld [vmem:[#allocation9 + $0x248] sm:$0xff] }
  0x56   : > { %350 = vst [vmem:[#allocation2 + $0xd1] sm:$0x1] %v3066_v0  ;;  %2787 = vmatpush.msra.mxu1 %v1256_v17  ;;  %2788 = vmatpush.msra.mxu2 %v1256_v17 }
  0x57   : > { %351 = vst [vmem:[#allocation2 + $0xe9] sm:$0x1] %v3066_v0  ;;  %1440 = vmatmul.f32.vlgmr.msra.gmra.mxu1 %v3253_v18  ;;  %2789 = vmatpush.msra.mxu3 %v1256_v17 }
  0x58   : > { %352 = vst [vmem:[#allocation2 + $0x101] sm:$0x1] %v3066_v0  ;;  %1626 = vmatpush.msrb.mxu2 %v1303_v19  ;;  %1513 = vmatpush.msrb.mxu1 %v1287_v21  ;;  %v3342_v19 = vld [vmem:[%s3205_s3 + $0xa0] sm:$0xff]  ;;  %v1294_v21 = vld [vmem:[#allocation9 + $0x130] sm:$0xff] }
  0x59   : > { %353 = vst [vmem:[#allocation2 + $0x119] sm:$0x1] %v3066_v0  ;;  %1739 = vmatpush.msrb.mxu3 %v1319_v23  ;;  %1415 = vmatpush.msra.mxu0 %v1256_v17  ;;  %v1279_v17 = vld [vmem:[#allocation9 + $0xb8] sm:$0xff]  ;;  %v1328_v23 = vld [vmem:[#allocation9 + $0x240] sm:$0xff] }
  0x5a   : > { %354 = vst [vmem:[#allocation2 + $0x131] sm:$0x1] %v3066_v0  ;;  %1627 = vmatpush.msrb.mxu2 %v1302_v24  ;;  %1514 = vmatpush.msrb.mxu1 %v1286_v26  ;;  %v1278_v24 = vld [vmem:[#allocation9 + $0xb0] sm:$0xff] }
  0x5b   : > { %355 = vst [vmem:[#allocation2 + $0x149] sm:$0x1] %v3066_v0  ;;  %1740 = vmatpush.msrb.mxu3 %v1318_v27  ;;  %1416 = vmatmul.f32.vlgmr.msra.gmra.mxu0 %v3066_v0  ;;  %v3347_v26 = vld [vmem:[%s3205_s3 + $0x18] sm:$0xff]  ;;  %v315_v27 = vld [vmem:[%s3205_s3 + $0xe0] sm:$0xff] }
  0x5c   : > { %356 = vst [vmem:[#allocation2 + $0x161] sm:$0x1] %v3066_v0  ;;  %1628 = vmatpush.msrb.mxu2 %v1301_v29  ;;  %1515 = vmatpush.msrb.mxu1 %v1285_v31 }
  0x5d   : > { %357 = vst [vmem:[#allocation2 + $0x179] sm:$0x1] %v3066_v0  ;;  %1741 = vmatpush.msrb.mxu3 %v1317_v32  ;;  %1852 = vmatpush.msrb.mxu0 %v1335_v33  ;;  %v1293_v33 = vld [vmem:[#allocation9 + $0x128] sm:$0xff] }
  0x5e   : > { %358 = vst [vmem:[#allocation2 + $0x191] sm:$0x1] %v3066_v0  ;;  %1629 = vmatpush.msrb.mxu2 %v1300_v35  ;;  %1516 = vmatpush.msrb.mxu1 %v1284_v37  ;;  %v1327_v35 = vld [vmem:[#allocation9 + $0x238] sm:$0xff]  ;;  %v3357_v37 = vld [vmem:[%s3205_s3 + $0x68] sm:$0xff] }
  0x5f   : > { %373 = vst [vmem:[#allocation2 + $0xc1] sm:$0xff] %v3258_v20  ;;  %1742 = vmatpush.msrb.mxu3 %v1316_v38  ;;  %1853 = vmatpush.msrb.mxu0 %v1334_v39  ;;  %v3360_v38 = vld [vmem:[%s3205_s3 + $0xa8] sm:$0xff] }
  0x60   : > { %381 = vst [vmem:[#allocation2 + $0x121] sm:$0xff] %v309_v22  ;;  %1517 = vmatpush.msrb.mxu1 %v1283_v41  ;;  %1630 = vmatpush.msrb.mxu2 %v1299_v43  ;;  %v1310_v22 = vld [vmem:[#allocation9 + $0x1b0] sm:$0xff]  ;;  %v1277_v39 = vld [vmem:[#allocation9 + $0xa8] sm:$0xff]  ;;  %v1308_v43 = vld [vmem:[#allocation9 + $0x1a0] sm:$0xff] }
  0x61   : > { %366 = vst [vmem:[#allocation2 + $0x69] sm:$0xff] %v3265_v25  ;;  %1743 = vmatpush.msrb.mxu3 %v1315_v44  ;;  %1854 = vmatpush.msrb.mxu0 %v1333_v47  ;;  %v1326_v44 = vld [vmem:[#allocation9 + $0x230] sm:$0xff]  ;;  %v1276_v47 = vld [vmem:[#allocation9 + $0xa0] sm:$0xff] }
  0x62   : > { %374 = vst [vmem:[#allocation2 + $0xc9] sm:$0xff] %v3269_v28  ;;  %1631 = vmatpush.msrb.mxu2 %v1298_v50  ;;  %1518 = vmatpush.msrb.mxu1 %v1282_v56  ;;  %v1307_v50 = vld [vmem:[#allocation9 + $0x198] sm:$0xff]  ;;  %v316_v56 = vld [vmem:[%s3205_s3 + $0xe8] sm:$0xff] }
  0x63   : > { %382 = vst [vmem:[#allocation2 + $0x129] sm:$0xff] %v310_v30  ;;  %1419 = vmatmul.f32.gmra.mxu0 %v3066_v0  ;;  %1744 = vmatpush.msrb.mxu3 %v1314_v53  ;;  %v1296_v0 = vld [vmem:[#allocation9 + $0x140] sm:$0xff]  ;;  %v1309_v30 = vld [vmem:[#allocation9 + $0x1a8] sm:$0xff]  ;;  %v1275_v53 = vld [vmem:[#allocation9 + $0x98] sm:$0xff] }
  0x64   : > { %367 = vst [vmem:[#allocation2 + $0x79] sm:$0xff] %v3274_v34  ;;  %1855 = vmatpush.msrb.mxu0 %v1332_v55  ;;  %1632 = vmatpush.msrb.mxu2 %v1297_v58  ;;  %v3370_v55 = vld [vmem:[%s3205_s3 + $0x20] sm:$0xff] }
  0x65   : > { %375 = vst [vmem:[#allocation2 + $0xd9] sm:$0xff] %v3278_v36  ;;  %1745 = vmatpush.msrb.mxu3 %v1313_v59  ;;  %1519 = vmatpush.msrb.mxu1 %v1281_v62  ;;  %v1306_v59 = vld [vmem:[#allocation9 + $0x190] sm:$0xff] }
  0x66   : > { %v3290_v46 = vld [vmem:[#allocation2 + $0xc0] sm:$0xff]  ;;  %383 = vst [vmem:[#allocation2 + $0x139] sm:$0xff] %v311_v40  ;;  %1856 = vmatpush.msrb.mxu0 %v1331_v61  ;;  %1633 = vmatpush.msrb.mxu2 %v1296_v0  ;;  %v1292_v40 = vld [vmem:[#allocation9 + $0x120] sm:$0xff] }
  0x67   : > { %1464 = vmatmul.f32.vlgmr.msra.gmra.mxu2 %v3290_v46  ;;  %v415_v49 = vld [vmem:[#allocation2 + $0x120] sm:$0xff]  ;;  %368 = vst [vmem:[#allocation2 + $0x81] sm:$0xff] %v3284_v42  ;;  %1746 = vmatpush.msrb.mxu3 %v1312_v2  ;;  %v1324_v2 = vld [vmem:[#allocation9 + $0x220] sm:$0xff] }
  0x68   : > { %1488 = vmatmul.f32.vlgmr.msra.gmra.mxu3 %v415_v49  ;;  %v3298_v52 = vld [vmem:[#allocation2 + $0x68] sm:$0xff]  ;;  %376 = vst [vmem:[#allocation2 + $0xe1] sm:$0xff] %v3288_v45  ;;  %1857 = vmatpush.msrb.mxu0 %v1330_v8  ;;  %v1289_v0 = vld [vmem:[#allocation9 + $0x108] sm:$0xff] }
  0x69   : > { %1443 = vmatmul.f32.gmra.mxu1 %v3298_v52  ;;  %359 = vst [vmem:[#allocation2 + $0x19] sm:$0xff] %v3293_v48  ;;  %v3315_v1 = vld [vmem:[#allocation2 + $0xc8] sm:$0xff]  ;;  %1634 = vmatpush.msrb.mxu2 %v1295_v11 }
  0x6a   : > { %384 = vst [vmem:[#allocation2 + $0x141] sm:$0xff] %v312_v51  ;;  %v416_v4 = vld [vmem:[#allocation2 + $0x128] sm:$0xff]  ;;  %1520 = vmatpush.msrb.mxu1 %v1280_v10  ;;  %1747 = vmatpush.msrb.mxu3 %v1311_v14  ;;  %v1325_v51 = vld [vmem:[#allocation9 + $0x228] sm:$0xff]  ;;  %v1288_v14 = vld [vmem:[#allocation9 + $0x100] sm:$0xff] }
  0x6b   : > { %369 = vst [vmem:[#allocation2 + $0x91] sm:$0xff] %v3302_v54  ;;  %v3325_v7 = vld [vmem:[#allocation2 + $0x78] sm:$0xff]  ;;  %1858 = vmatpush.msrb.mxu0 %v1329_v16  ;;  %1635 = vmatpush.msrb.mxu2 %v1294_v21  ;;  %v1291_v49 = vld [vmem:[#allocation9 + $0x118] sm:$0xff]  ;;  %v1290_v62 = vld [vmem:[#allocation9 + $0x110] sm:$0xff] }
  0x6c   : > { %377 = vst [vmem:[#allocation2 + $0xf1] sm:$0xff] %v3307_v57  ;;  %v3350_v29 = vld [vmem:[#allocation2 + $0xd8] sm:$0xff]  ;;  %1521 = vmatpush.msrb.mxu1 %v1279_v17  ;;  %1748 = vmatpush.msrb.mxu3 %v1310_v22  ;;  %v1323_v11 = vld [vmem:[#allocation9 + $0x218] sm:$0xff]  ;;  %v1322_v17 = vld [vmem:[#allocation9 + $0x210] sm:$0xff] }
  0x6d   : > { %360 = vst [vmem:[#allocation2 + $0x21] sm:$0xff] %v3310_v60  ;;  %v417_v31 = vld [vmem:[#allocation2 + $0x138] sm:$0xff]  ;;  %1859 = vmatpush.msrb.mxu0 %v1328_v23  ;;  %1636 = vmatpush.msrb.mxu2 %v1293_v33 }
  0x6e   : > { %385 = vst [vmem:[#allocation2 + $0x151] sm:$0xff] %v313_v63  ;;  %v3353_v32 = vld [vmem:[#allocation2 + $0x80] sm:$0xff]  ;;  %1522 = vmatpush.msrb.mxu1 %v1278_v24  ;;  %1749 = vmatpush.msrb.mxu3 %v1309_v30  ;;  %v1304_v16 = vld [vmem:[#allocation9 + $0x180] sm:$0xff] }
  0x6f   : > { %1467 = vmatmul.f32.gmra.mxu2 %v3315_v1  ;;  %370 = vst [vmem:[#allocation2 + $0x99] sm:$0xff] %v3319_v3  ;;  %1860 = vmatpush.msrb.mxu0 %v1327_v35  ;;  %v3373_v58 = vld [vmem:[#allocation2 + $0xe0] sm:$0xff]  ;;  %v1272_v21 = vld [vmem:[#allocation9 + $0x80] sm:$0xff]  ;;  %v1383_v35 = vld [vmem:[#allocation9 + $0x3f8] sm:$0xff] }
  0x70   : > { %1491 = vmatmul.f32.gmra.mxu3 %v416_v4  ;;  %v3333_v13 = vld [vmem:[#allocation2 + $0x18] sm:$0xff]  ;;  %378 = vst [vmem:[#allocation2 + $0xf9] sm:$0xff] %v3323_v6  ;;  %1523 = vmatpush.msrb.mxu1 %v1277_v39  ;;  %v1274_v4 = vld [vmem:[#allocation9 + $0x90] sm:$0xff]  ;;  %v1351_v39 = vld [vmem:[#allocation9 + $0x2f8] sm:$0xff] }
  0x71   : > { %1446 = vmatmul.f32.gmra.mxu1 %v3325_v7  ;;  %361 = vst [vmem:[#allocation2 + $0x31] sm:$0xff] %v3328_v9  ;;  %1422 = vmatmul.f32.gmra.mxu0 %v3333_v13  ;;  %v418_v61 = vld [vmem:[#allocation2 + $0x140] sm:$0xff]  ;;  %v3384_v22 = vld [vmem:[%s3205_s3 + $0x28] sm:$0xff] }
  0x72   : > { %386 = vst [vmem:[#allocation2 + $0x159] sm:$0xff] %v314_v12  ;;  %1637 = vmatpush.msrb.mxu2 %v1292_v40  ;;  %1750 = vmatpush.msrb.mxu3 %v1308_v43  ;;  %v3376_v63 = vld [vmem:[#allocation2 + $0x90] sm:$0xff]  ;;  %v1305_v10 = vld [vmem:[#allocation9 + $0x188] sm:$0xff] }
  0x73   : > { %371 = vst [vmem:[#allocation2 + $0xa9] sm:$0xff] %v3337_v15  ;;  %1861 = vmatpush.msrb.mxu0 %v1326_v44  ;;  %1524 = vmatpush.msrb.mxu1 %v1276_v47  ;;  %v1273_v12 = vld [vmem:[#allocation9 + $0x88] sm:$0xff]  ;;  %v3386_v23 = vld [vmem:[#allocation2 + $0xf0] sm:$0xff] }
  0x74   : > { %379 = vst [vmem:[#allocation2 + $0x109] sm:$0xff] %v3342_v19  ;;  %v3364_v41 = vld [vmem:[#allocation2 + $0x20] sm:$0xff]  ;;  %1638 = vmatpush.msrb.mxu2 %v1291_v49  ;;  %1751 = vmatpush.msrb.mxu3 %v1307_v50  ;;  %v1320_v40 = vld [vmem:[#allocation9 + $0x200] sm:$0xff]  ;;  %v1399_v50 = vld [vmem:[#allocation9 + $0x478] sm:$0xff] }
  0x75   : > { %362 = vst [vmem:[#allocation2 + $0x39] sm:$0xff] %v3347_v26  ;;  %1862 = vmatpush.msrb.mxu0 %v1325_v51  ;;  %1525 = vmatpush.msrb.mxu1 %v1275_v53  ;;  %v419_v24 = vld [vmem:[#allocation2 + $0x150] sm:$0xff]  ;;  %v1321_v33 = vld [vmem:[#allocation9 + $0x208] sm:$0xff] }
  0x76   : > { %387 = vst [vmem:[#allocation2 + $0x169] sm:$0xff] %v315_v27  ;;  %1752 = vmatpush.msrb.mxu3 %v1306_v59  ;;  %1639 = vmatpush.msrb.mxu2 %v1290_v62  ;;  %v3389_v27 = vld [vmem:[#allocation2 + $0x98] sm:$0xff]  ;;  %v1366_v59 = vld [vmem:[#allocation9 + $0x370] sm:$0xff] }
  0x77   : > { %1470 = vmatmul.f32.gmra.mxu2 %v3350_v29  ;;  %372 = vst [vmem:[#allocation2 + $0xb1] sm:$0xff] %v3357_v37  ;;  %1863 = vmatpush.msrb.mxu0 %v1324_v2  ;;  %v3396_v43 = vld [vmem:[#allocation2 + $0xf8] sm:$0xff]  ;;  %v1382_v62 = vld [vmem:[#allocation9 + $0x3f0] sm:$0xff] }
  0x78   : > { %1494 = vmatmul.f32.gmra.mxu3 %v417_v31  ;;  %380 = vst [vmem:[#allocation2 + $0x111] sm:$0xff] %v3360_v38  ;;  %v3379_v8 = vld [vmem:[#allocation2 + $0x30] sm:$0xff]  ;;  %1526 = vmatpush.msrb.mxu1 %v1274_v4  ;;  %v1350_v2 = vld [vmem:[#allocation9 + $0x2f0] sm:$0xff] }
  0x79   : > { %1449 = vmatmul.f32.gmra.mxu1 %v3353_v32  ;;  %1425 = vmatmul.f32.gmra.mxu0 %v3364_v41  ;;  %363 = vst [vmem:[#allocation2 + $0x49] sm:$0xff] %v3370_v55  ;;  %v1367_v31 = vld [vmem:[#allocation9 + $0x378] sm:$0xff]  ;;  %v420_v44 = vld [vmem:[#allocation2 + $0x158] sm:$0xff] }
  0x7a   : > { %388 = vst [vmem:[#allocation2 + $0x171] sm:$0xff] %v316_v56  ;;  %1640 = vmatpush.msrb.mxu2 %v1289_v0  ;;  %1753 = vmatpush.msrb.mxu3 %v1305_v10  ;;  %v3398_v47 = vld [vmem:[#allocation2 + $0xa8] sm:$0xff] }
  0x7b   : > { %1864 = vmatpush.msrb.mxu0 %v1323_v11  ;;  %1527 = vmatpush.msrb.mxu1 %v1273_v12  ;;  %364 = vst [vmem:[#allocation2 + $0x51] sm:$0xff] %v3384_v22  ;;  %v3405_v51 = vld [vmem:[#allocation2 + $0x108] sm:$0xff] }
  0x7c   : > { %1641 = vmatpush.msrb.mxu2 %v1288_v14  ;;  %1754 = vmatpush.msrb.mxu3 %v1304_v16  ;;  %v3392_v30 = vld [vmem:[#allocation2 + $0x38] sm:$0xff]  ;;  %v455_v10 = vld [vmem:[#allocation2 + $0x1] sm:$0xff]  ;;  %v456_v14 = vld [vmem:[#allocation2 + $0x9] sm:$0xff] }
  0x7d   : > { %1865 = vmatpush.msrb.mxu0 %v1322_v17  ;;  %1528 = vmatpush.msrb.mxu1 %v1272_v21  ;;  %v421_v53 = vld [vmem:[#allocation2 + $0x168] sm:$0xff]  ;;  %v1365_v16 = vld [vmem:[#allocation9 + $0x368] sm:$0xff] }
  0x7e   : > { %2078 = vmatpush.msra.mxu2 %v1367_v31  ;;  %2191 = vmatpush.msra.mxu3 %v1383_v35  ;;  %v3407_v56 = vld [vmem:[#allocation2 + $0xb0] sm:$0xff]  ;;  %v1398_v11 = vld [vmem:[#allocation9 + $0x470] sm:$0xff]  ;;  %v1381_v17 = vld [vmem:[#allocation9 + $0x3e8] sm:$0xff] }
  0x7f   : > { %1473 = vmatmul.f32.gmra.mxu2 %v3373_v58  ;;  %1866 = vmatpush.msrb.mxu0 %v1321_v33  ;;  %v3414_v4 = vld [vmem:[#allocation2 + $0x110] sm:$0xff]  ;;  %v519_v12 = vld [vmem:[#allocation2 + $0x2] sm:$0xff]  ;;  %v1349_v21 = vld [vmem:[#allocation9 + $0x2e8] sm:$0xff] }
  0x80   : > { %1497 = vmatmul.f32.gmra.mxu3 %v418_v61  ;;  %1965 = vmatpush.msra.mxu1 %v1351_v39  ;;  %v3401_v49 = vld [vmem:[#allocation2 + $0x48] sm:$0xff]  ;;  %v1397_v31 = vld [vmem:[#allocation9 + $0x468] sm:$0xff]  ;;  %v1380_v35 = vld [vmem:[#allocation9 + $0x3e0] sm:$0xff] }
  0x81   : > { %1452 = vmatmul.f32.gmra.mxu1 %v3376_v63  ;;  %1428 = vmatmul.f32.gmra.mxu0 %v3379_v8  ;;  %v422_v0 = vld [vmem:[#allocation2 + $0x170] sm:$0xff]  ;;  %v521_v33 = vld [vmem:[#allocation2 + $0x1a] sm:$0xff] }
  0x82   : > { %1867 = vmatpush.msrb.mxu0 %v1320_v40  ;;  %v3410_v61 = vld [vmem:[#allocation2 + $0x50] sm:$0xff]  ;;  %2079 = vmatpush.msra.mxu2 %v1366_v59 }
  0x83   : > { %2192 = vmatpush.msra.mxu3 %v1382_v62  ;;  %1966 = vmatpush.msra.mxu1 %v1350_v2  ;;  %v1348_v39 = vld [vmem:[#allocation9 + $0x2e0] sm:$0xff]  ;;  %v1363_v40 = vld [vmem:[#allocation9 + $0x358] sm:$0xff]  ;;  %v1394_v62 = vld [vmem:[#allocation9 + $0x450] sm:$0xff] }
  0x84   : > { %2304 = vmatpush.msra.mxu0 %v1399_v50  ;;  %2080 = vmatpush.msra.mxu2 %v1365_v16  ;;  %v1362_v50 = vld [vmem:[#allocation9 + $0x350] sm:$0xff]  ;;  %v526_v59 = vld [vmem:[#allocation2 + $0x52] sm:$0xff]  ;;  %v1361_v2 = vld [vmem:[#allocation9 + $0x348] sm:$0xff] }
  0x85   : > { %2193 = vmatpush.msra.mxu3 %v1381_v17  ;;  %1967 = vmatpush.msra.mxu1 %v1349_v21  ;;  %v1393_v16 = vld [vmem:[#allocation9 + $0x448] sm:$0xff] }
  0x86   : > { %2305 = vmatpush.msra.mxu0 %v1398_v11  ;;  %v529_v21 = vld [vmem:[#allocation2 + $0x7a] sm:$0xff] }
  0x87   : > { %1476 = vmatmul.f32.gmra.mxu2 %v3386_v23  ;;  %2194 = vmatpush.msra.mxu3 %v1380_v35 }
  0x88   : > { %1500 = vmatmul.f32.gmra.mxu3 %v419_v24  ;;  %v520_v24 = vld [vmem:[#allocation2 + $0xa] sm:$0xff]  ;;  %2306 = vmatpush.msra.mxu0 %v1397_v31  ;;  %v1360_v31 = vld [vmem:[#allocation9 + $0x340] sm:$0xff] }
  0x89   : > { %1455 = vmatmul.f32.gmra.mxu1 %v3389_v27  ;;  %1431 = vmatmul.f32.gmra.mxu0 %v3392_v30 }
  0x8a   : > { %1968 = vmatpush.msra.mxu1 %v1348_v39  ;;  %v530_v39 = vld [vmem:[#allocation2 + $0x82] sm:$0xff] }
  0x8f   : > { %1479 = vmatmul.f32.gmra.mxu2 %v3396_v43 }
  0x90   : > { %1503 = vmatmul.f32.gmra.mxu3 %v420_v44  ;;  %v1347_v44 = vld [vmem:[#allocation9 + $0x2d8] sm:$0xff] }
  0x91   : > { %1458 = vmatmul.f32.gmra.mxu1 %v3398_v47  ;;  %1434 = vmatmul.f32.gmra.mxu0 %v3401_v49 }
  0x92   : > { %1969 = vmatpush.msra.mxu1 %v1347_v44  ;;  %v1359_v44 = vld [vmem:[#allocation9 + $0x338] sm:$0xff] }
  0x97   : > { %1482 = vmatmul.f32.gmra.mxu2 %v3405_v51 }
  0x98   : > { %1506 = vmatmul.f32.gmra.mxu3 %v421_v53  ;;  %v1346_v53 = vld [vmem:[#allocation9 + $0x2d0] sm:$0xff] }
  0x99   : > { %1461 = vmatmul.f32.gmra.mxu1 %v3407_v56  ;;  %1437 = vmatmul.f32.gmra.mxu0 %v3410_v61 }
  0x9a   : > { %1970 = vmatpush.msra.mxu1 %v1346_v53  ;;  %v1391_v53 = vld [vmem:[#allocation9 + $0x438] sm:$0xff] }
  0x9f   : > { %1485 = vmatmul.f32.gmra.mxu2 %v3414_v4 }
  0xa0   : > { %1509 = vmatmul.f32.gmra.mxu3 %v422_v0 }
  0xa1   : > { %1529 = vmatmul.f32.vlgmr.msrb.gmra.mxu1 %v455_v10  ;;  %1868 = vmatmul.f32.vlgmr.msrb.gmra.mxu0 %v3293_v48  ;;  %v1377_v10 = vld [vmem:[#allocation9 + $0x3c8] sm:$0xff] }
  0xa7   : > { %1642 = vmatmul.f32.vlgmr.msrb.gmra.mxu2 %v519_v12  ;;  %v528_v12 = vld [vmem:[#allocation2 + $0x6a] sm:$0xff] }
  0xa8   : > { %1755 = vmatmul.f32.vlgmr.msrb.gmra.mxu3 %v3333_v13  ;;  %v1364_v13 = vld [vmem:[#allocation9 + $0x360] sm:$0xff] }
  0xa9   : > { %1532 = vmatmul.f32.gmra.mxu1 %v456_v14  ;;  %1871 = vmatmul.f32.gmra.mxu0 %v3310_v60 }
  0xaa   : > { %2081 = vmatpush.msra.mxu2 %v1364_v13  ;;  %v1344_v13 = vld [vmem:[#allocation9 + $0x2c0] sm:$0xff] }
  0xac   : > { %2082 = vmatpush.msra.mxu2 %v1363_v40  ;;  %v531_v40 = vld [vmem:[#allocation2 + $0x92] sm:$0xff] }
  0xae   : > { %2083 = vmatpush.msra.mxu2 %v1362_v50  ;;  %v532_v50 = vld [vmem:[#allocation2 + $0x9a] sm:$0xff] }
  0xaf   : > { %1645 = vmatmul.f32.gmra.mxu2 %v520_v24 }
  0xb0   : > { %1758 = vmatmul.f32.gmra.mxu3 %v3364_v41  ;;  %v522_v41 = vld [vmem:[#allocation2 + $0x22] sm:$0xff]  ;;  %2084 = vmatpush.msra.mxu2 %v1361_v2 }
  0xb1   : > { %1535 = vmatmul.f32.gmra.mxu1 %v3293_v48  ;;  %1874 = vmatmul.f32.gmra.mxu0 %v3328_v9  ;;  %v1396_v48 = vld [vmem:[#allocation9 + $0x460] sm:$0xff]  ;;  %v1358_v2 = vld [vmem:[#allocation9 + $0x330] sm:$0xff] }
  0xb2   : > { %2307 = vmatpush.msra.mxu0 %v1396_v48  ;;  %2085 = vmatpush.msra.mxu2 %v1360_v31  ;;  %v1392_v48 = vld [vmem:[#allocation9 + $0x440] sm:$0xff]  ;;  %v1390_v31 = vld [vmem:[#allocation9 + $0x430] sm:$0xff] }
  0xb4   : > { %2086 = vmatpush.msra.mxu2 %v1359_v44 }
  0xb6   : > { %2087 = vmatpush.msra.mxu2 %v1358_v2 }
  0xb7   : > { %1648 = vmatmul.f32.gmra.mxu2 %v521_v33  ;;  %v1376_v33 = vld [vmem:[#allocation9 + $0x3c0] sm:$0xff] }
  0xb8   : > { %1761 = vmatmul.f32.gmra.mxu3 %v3379_v8  ;;  %v523_v8 = vld [vmem:[#allocation2 + $0x32] sm:$0xff] }
  0xb9   : > { %1538 = vmatmul.f32.gmra.mxu1 %v3310_v60  ;;  %1877 = vmatmul.f32.gmra.mxu0 %v3347_v26  ;;  %v1379_v60 = vld [vmem:[#allocation9 + $0x3d8] sm:$0xff] }
  0xba   : > { %2195 = vmatpush.msra.mxu3 %v1379_v60 }
  0xbf   : > { %1651 = vmatmul.f32.gmra.mxu2 %v522_v41 }
  0xc0   : > { %1764 = vmatmul.f32.gmra.mxu3 %v3392_v30  ;;  %v524_v30 = vld [vmem:[#allocation2 + $0x3a] sm:$0xff] }
  0xc1   : > { %1541 = vmatmul.f32.gmra.mxu1 %v3328_v9  ;;  %1880 = vmatmul.f32.gmra.mxu0 %v3370_v55  ;;  %v1395_v9 = vld [vmem:[#allocation9 + $0x458] sm:$0xff] }
  0xc2   : > { %2308 = vmatpush.msra.mxu0 %v1395_v9 }
  0xc4   : > { %2309 = vmatpush.msra.mxu0 %v1394_v62  ;;  %v533_v62 = vld [vmem:[#allocation2 + $0xaa] sm:$0xff] }
  0xc6   : > { %2310 = vmatpush.msra.mxu0 %v1393_v16  ;;  %v534_v16 = vld [vmem:[#allocation2 + $0xb2] sm:$0xff] }
  0xc7   : > { %1654 = vmatmul.f32.gmra.mxu2 %v523_v8 }
  0xc8   : > { %1767 = vmatmul.f32.gmra.mxu3 %v3401_v49  ;;  %v525_v49 = vld [vmem:[#allocation2 + $0x4a] sm:$0xff]  ;;  %2311 = vmatpush.msra.mxu0 %v1392_v48  ;;  %v1357_v48 = vld [vmem:[#allocation9 + $0x328] sm:$0xff] }
  0xc9   : > { %1544 = vmatmul.f32.gmra.mxu1 %v3347_v26  ;;  %1883 = vmatmul.f32.gmra.mxu0 %v3384_v22  ;;  %v1378_v26 = vld [vmem:[#allocation9 + $0x3d0] sm:$0xff] }
  0xca   : > { %2196 = vmatpush.msra.mxu3 %v1378_v26  ;;  %2312 = vmatpush.msra.mxu0 %v1391_v53  ;;  %v536_v53 = vld [vmem:[#allocation2 + $0xca] sm:$0xff] }
  0xcb   : > { %2088 = vmatpush.msra.mxu2 %v1357_v48 }
  0xcc   : > { %2197 = vmatpush.msra.mxu3 %v1377_v10  ;;  %v1374_v10 = vld [vmem:[#allocation9 + $0x3b0] sm:$0xff]  ;;  %2313 = vmatpush.msra.mxu0 %v1390_v31  ;;  %v537_v31 = vld [vmem:[#allocation2 + $0xda] sm:$0xff] }
  0xce   : > { %2198 = vmatpush.msra.mxu3 %v1376_v33 }
  0xcf   : > { %1657 = vmatmul.f32.gmra.mxu2 %v524_v30  ;;  %v1375_v30 = vld [vmem:[#allocation9 + $0x3b8] sm:$0xff] }
  0xd0   : > { %1770 = vmatmul.f32.gmra.mxu3 %v3410_v61 }
  0xd1   : > { %1547 = vmatmul.f32.gmra.mxu1 %v3370_v55  ;;  %1886 = vmatmul.f32.gmra.mxu0 %v3227_v5 }
  0xd2   : > { %2199 = vmatpush.msra.mxu3 %v1375_v30 }
  0xd4   : > { %v3438_v61 = vpop.f32.mrf.mxu1  ;;  %2200 = vmatpush.msra.mxu3 %v1374_v10 }
  0xd7   : > { %1660 = vmatmul.f32.gmra.mxu2 %v525_v49  ;;  %v1343_v49 = vld [vmem:[#allocation9 + $0x2b8] sm:$0xff] }
  0xd8   : > { %1773 = vmatmul.f32.gmra.mxu3 %v3253_v18  ;;  %v3441_v55 = vpop.f32.mrf.mxu0  ;;  %v527_v18 = vld [vmem:[#allocation2 + $0x62] sm:$0xff] }
  0xd9   : > { %1550 = vmatmul.f32.gmra.mxu1 %v3384_v22  ;;  %1889 = vmatmul.f32.gmra.mxu0 %v3265_v25 }
  0xdf   : > { %1663 = vmatmul.f32.gmra.mxu2 %v526_v59 }
  0xe0   : > { %1776 = vmatmul.f32.gmra.mxu3 %v3298_v52  ;;  %v3448_v0 = vpop.f32.mrf.mxu0 }
  0xe1   : > { %1553 = vmatmul.f32.gmra.mxu1 %v3227_v5  ;;  %1892 = vmatmul.f32.gmra.mxu0 %v3274_v34  ;;  %v1345_v5 = vld [vmem:[#allocation9 + $0x2c8] sm:$0xff] }
  0xe2   : > { %1971 = vmatpush.msra.mxu1 %v1345_v5 }
  0xe4   : > { %1972 = vmatpush.msra.mxu1 %v1344_v13  ;;  %v535_v13 = vld [vmem:[#allocation2 + $0xc2] sm:$0xff] }
  0xe6   : > { %v3445_v22 = vpop.f32.mrf.mxu1  ;;  %1973 = vmatpush.msra.mxu1 %v1343_v49 }
  0xe7   : > { %1666 = vmatmul.f32.gmra.mxu2 %v527_v18 }
  0xe8   : > { %1779 = vmatmul.f32.gmra.mxu3 %v3325_v7 }
  0xe9   : > { %1556 = vmatmul.f32.gmra.mxu1 %v3265_v25  ;;  %1895 = vmatmul.f32.gmra.mxu0 %v3284_v42 }
  0xea   : > { %v3451_v52 = vpop.f32.mrf.mxu2 }
  0xeb   : > { %v3453_v11 = vpop.f32.mrf.mxu3 }
  0xee   : > { %v3456_v14 = vpop.f32.mrf.mxu1  ;;  %v3459_v7 = vpop.f32.mrf.mxu0 }
  0xef   : > { %1669 = vmatmul.f32.gmra.mxu2 %v528_v12  ;;  %v1342_v12 = vld [vmem:[#allocation9 + $0x2b0] sm:$0xff] }
  0xf0   : > { %1782 = vmatmul.f32.gmra.mxu3 %v3353_v32  ;;  %1974 = vmatpush.msra.mxu1 %v1342_v12 }
  0xf1   : > { %1559 = vmatmul.f32.gmra.mxu1 %v3274_v34  ;;  %1898 = vmatmul.f32.gmra.mxu0 %v3302_v54 }
  0xf2   : > { %v3462_v25 = vpop.f32.mrf.mxu2 }
  0xf3   : > { %v3464_v17 = vpop.f32.mrf.mxu3 }
  0xf6   : > { %v3467_v24 = vpop.f32.mrf.mxu1  ;;  %v3470_v32 = vpop.f32.mrf.mxu0 }
  0xf7   : > { %1672 = vmatmul.f32.gmra.mxu2 %v529_v21 }
  0xf8   : > { %1785 = vmatmul.f32.gmra.mxu3 %v3376_v63 }
  0xf9   : > { %1562 = vmatmul.f32.gmra.mxu1 %v3284_v42  ;;  %1901 = vmatmul.f32.gmra.mxu0 %v3319_v3 }
  0xfa   : > { %v3473_v34 = vpop.f32.mrf.mxu2 }
  0xfb   : > { %v3475_v35 = vpop.f32.mrf.mxu3 }
  0xfe   : > { %v3478_v41 = vpop.f32.mrf.mxu1  ;;  %v3481_v63 = vpop.f32.mrf.mxu0 }
  0xff   : > { %1675 = vmatmul.f32.gmra.mxu2 %v530_v39 }
 0x100   : > { %1788 = vmatmul.f32.gmra.mxu3 %v3389_v27 }
 0x101   : > { %1565 = vmatmul.f32.gmra.mxu1 %v3302_v54  ;;  %1904 = vmatmul.f32.gmra.mxu0 %v3337_v15 }
 0x102   : > { %v3484_v42 = vpop.f32.mrf.mxu2 }
 0x103   : > { %v3486_v8 = vpop.f32.mrf.mxu3 }
 0x106   : > { %v3489_v60 = vpop.f32.mrf.mxu1  ;;  %v3492_v27 = vpop.f32.mrf.mxu0 }
 0x107   : > { %1678 = vmatmul.f32.gmra.mxu2 %v531_v40 }
 0x108   : > { %1791 = vmatmul.f32.gmra.mxu3 %v3398_v47 }
 0x109   : > { %1568 = vmatmul.f32.gmra.mxu1 %v3319_v3  ;;  %1907 = vmatmul.f32.gmra.mxu0 %v3357_v37 }
 0x10a   : > { %v3495_v54 = vpop.f32.mrf.mxu2 }
 0x10b   : > { %v3497_v9 = vpop.f32.mrf.mxu3 }
 0x10e   : > { %v3500_v26 = vpop.f32.mrf.mxu1  ;;  %v3503_v47 = vpop.f32.mrf.mxu0 }
 0x10f   : > { %1681 = vmatmul.f32.gmra.mxu2 %v532_v50  ;;  %v1341_v50 = vld [vmem:[#allocation9 + $0x2a8] sm:$0xff] }
 0x110   : > { %1794 = vmatmul.f32.gmra.mxu3 %v3407_v56  ;;  %1975 = vmatpush.msra.mxu1 %v1341_v50 }
 0x111   : > { %1571 = vmatmul.f32.gmra.mxu1 %v3337_v15  ;;  %1910 = vmatmul.f32.gmra.mxu0 %v3258_v20 }
 0x112   : > { %v3506_v3 = vpop.f32.mrf.mxu2 }
 0x113   : > { %v3508_v59 = vpop.f32.mrf.mxu3 }
 0x116   : > { %v3511_v18 = vpop.f32.mrf.mxu1  ;;  %v3514_v56 = vpop.f32.mrf.mxu0 }
 0x117   : > { %1684 = vmatmul.f32.gmra.mxu2 %v533_v62 }
 0x118   : > { %1797 = vmatmul.f32.gmra.mxu3 %v3290_v46 }
 0x119   : > { %1574 = vmatmul.f32.gmra.mxu1 %v3357_v37  ;;  %1913 = vmatmul.f32.gmra.mxu0 %v3269_v28 }
 0x11a   : > { %v3517_v15 = vpop.f32.mrf.mxu2 }
 0x11b   : > { %v3519_v5 = vpop.f32.mrf.mxu3 }
 0x11e   : > { %v1530_v21 = vpop.f32.mrf.mxu1  ;;  %v1869_v46 = vpop.f32.mrf.mxu0 }
 0x11f   : > { %1687 = vmatmul.f32.gmra.mxu2 %v534_v16  ;;  %v1531_v44 = vadd.f32 %v1530_v21, %v3441_v55  ;;  %v1389_v55 = vld [vmem:[#allocation9 + $0x428] sm:$0xff] }
 0x120   : > { %1800 = vmatmul.f32.gmra.mxu3 %v3315_v1  ;;  %v1373_v1 = vld [vmem:[#allocation9 + $0x3a8] sm:$0xff]  ;;  %2314 = vmatpush.msra.mxu0 %v1389_v55 }
 0x121   : > { %1577 = vmatmul.f32.gmra.mxu1 %v3258_v20  ;;  %1916 = vmatmul.f32.gmra.mxu0 %v3278_v36 }
 0x122   : > { %v3524_v37 = vpop.f32.mrf.mxu2  ;;  %2201 = vmatpush.msra.mxu3 %v1373_v1  ;;  %v1356_v1 = vld [vmem:[#allocation9 + $0x320] sm:$0xff] }
 0x123   : > { %v3526_v33 = vpop.f32.mrf.mxu3  ;;  %2089 = vmatpush.msra.mxu2 %v1356_v1  ;;  %v1339_v1 = vld [vmem:[#allocation9 + $0x298] sm:$0xff] }
 0x126   : > { %v1533_v39 = vpop.f32.mrf.mxu1  ;;  %v1872_v40 = vpop.f32.mrf.mxu0 }
 0x127   : > { %1690 = vmatmul.f32.gmra.mxu2 %v535_v13 }
 0x128   : > { %1803 = vmatmul.f32.gmra.mxu3 %v3350_v29 }
 0x129   : > { %1580 = vmatmul.f32.gmra.mxu1 %v3269_v28  ;;  %1919 = vmatmul.f32.gmra.mxu0 %v3288_v45  ;;  %v1534_v28 = vadd.f32 %v1533_v39, %v3448_v0  ;;  %v1372_v0 = vld [vmem:[#allocation9 + $0x3a0] sm:$0xff] }
 0x12a   : > { %v1643_v20 = vpop.f32.mrf.mxu2  ;;  %2202 = vmatpush.msra.mxu3 %v1372_v0 }
 0x12b   : > { %v1644_v30 = vadd.f32 %v1643_v20, %v1531_v44  ;;  %v1756_v49 = vpop.f32.mrf.mxu3 }
 0x12d   : > { %v1757_v62 = vadd.f32 %v1756_v49, %v1644_v30  ;;  %v1340_v30 = vld [vmem:[#allocation9 + $0x2a0] sm:$0xff] }
 0x12e   : > { %v1536_v2 = vpop.f32.mrf.mxu1  ;;  %v1875_v29 = vpop.f32.mrf.mxu0  ;;  %1976 = vmatpush.msra.mxu1 %v1340_v30 }
 0x12f   : > { %v3533_v10 = vadd.f32 %v1869_v46, %v1757_v62  ;;  %1693 = vmatmul.f32.gmra.mxu2 %v536_v53 }
 0x130   : > { %1806 = vmatmul.f32.gmra.mxu3 %v3373_v58  ;;  %1977 = vmatpush.msra.mxu1 %v1339_v1 }
 0x131   : > { %1583 = vmatmul.f32.gmra.mxu1 %v3278_v36  ;;  %1922 = vmatmul.f32.gmra.mxu0 %v3307_v57  ;;  %v1537_v36 = vadd.f32 %v1536_v2, %v3459_v7  ;;  %v1388_v7 = vld [vmem:[#allocation9 + $0x420] sm:$0xff] }
 0x132   : > { %v1646_v12 = vpop.f32.mrf.mxu2  ;;  %2315 = vmatpush.msra.mxu0 %v1388_v7  ;;  %v605_v7 = vld [vmem:[#allocation2 + $0x120] sm:$0xff] }
 0x133   : > { %v1647_v16 = vadd.f32 %v1646_v12, %v1534_v28  ;;  %v1759_v21 = vpop.f32.mrf.mxu3  ;;  %v539_v28 = vld [vmem:[#allocation2 + $0xf2] sm:$0xff] }
 0x135   : > { %v1760_v13 = vadd.f32 %v1759_v21, %v1647_v16  ;;  %v1355_v21 = vld [vmem:[#allocation9 + $0x318] sm:$0xff] }
 0x136   : > { %v1539_v48 = vpop.f32.mrf.mxu1  ;;  %v1878_v58 = vpop.f32.mrf.mxu0  ;;  %2090 = vmatpush.msra.mxu2 %v1355_v21  ;;  %v542_v21 = vld [vmem:[#allocation2 + $0x112] sm:$0xff] }
 0x137   : > { %v3539_v46 = vadd.f32 %v1872_v40, %v1760_v13  ;;  %1696 = vmatmul.f32.gmra.mxu2 %v537_v31  ;;  %v538_v40 = vld [vmem:[#allocation2 + $0xe2] sm:$0xff] }
 0x138   : > { %1809 = vmatmul.f32.gmra.mxu3 %v3386_v23 }
 0x139   : > { %1586 = vmatmul.f32.gmra.mxu1 %v3288_v45  ;;  %1925 = vmatmul.f32.gmra.mxu0 %v3323_v6  ;;  %v1540_v45 = vadd.f32 %v1539_v48, %v3470_v32  ;;  %v1371_v32 = vld [vmem:[#allocation9 + $0x398] sm:$0xff] }
 0x13a   : > { %v1649_v39 = vpop.f32.mrf.mxu2  ;;  %2203 = vmatpush.msra.mxu3 %v1371_v32  ;;  %v606_v32 = vld [vmem:[#allocation2 + $0x128] sm:$0xff] }
 0x13b   : > { %v1650_v44 = vadd.f32 %v1649_v39, %v1537_v36  ;;  %v1762_v20 = vpop.f32.mrf.mxu3 }
 0x13d   : > { %v1763_v49 = vadd.f32 %v1762_v20, %v1650_v44  ;;  %v1387_v44 = vld [vmem:[#allocation9 + $0x418] sm:$0xff] }
 0x13e   : > { %v1542_v50 = vpop.f32.mrf.mxu1  ;;  %v1881_v23 = vpop.f32.mrf.mxu0  ;;  %2316 = vmatpush.msra.mxu0 %v1387_v44 }
 0x13f   : > { %v3545_v53 = vadd.f32 %v1875_v29, %v1763_v49  ;;  %1699 = vmatmul.f32.gmra.mxu2 %v538_v40  ;;  %v541_v49 = vld [vmem:[#allocation2 + $0x10a] sm:$0xff] }
 0x140   : > { %1812 = vmatmul.f32.gmra.mxu3 %v3396_v43 }
 0x141   : > { %1589 = vmatmul.f32.gmra.mxu1 %v3307_v57  ;;  %1928 = vmatmul.f32.gmra.mxu0 %v3342_v19  ;;  %v1543_v57 = vadd.f32 %v1542_v50, %v3481_v63  ;;  %v669_v63 = vld [vmem:[#allocation2 + $0x121] sm:$0xff] }
 0x142   : > { %v1652_v62 = vpop.f32.mrf.mxu2 }
 0x143   : > { %v1653_v2 = vadd.f32 %v1652_v62, %v1540_v45  ;;  %v1765_v55 = vpop.f32.mrf.mxu3 }
 0x145   : > { %v1766_v12 = vadd.f32 %v1765_v55, %v1653_v2  ;;  %v670_v2 = vld [vmem:[#allocation2 + $0x129] sm:$0xff] }
 0x146   : > { %v1545_v16 = vpop.f32.mrf.mxu1  ;;  %v1884_v43 = vpop.f32.mrf.mxu0 }
 0x147   : > { %v3551_v29 = vadd.f32 %v1878_v58, %v1766_v12  ;;  %1702 = vmatmul.f32.gmra.mxu2 %v539_v28  ;;  %v540_v58 = vld [vmem:[#allocation2 + $0xfa] sm:$0xff] }
 0x148   : > { %1815 = vmatmul.f32.gmra.mxu3 %v3405_v51 }
 0x149   : > { %1592 = vmatmul.f32.gmra.mxu1 %v3323_v6  ;;  %1931 = vmatmul.f32.gmra.mxu0 %v3360_v38  ;;  %v1546_v6 = vadd.f32 %v1545_v16, %v3492_v27  ;;  %v1370_v27 = vld [vmem:[#allocation9 + $0x390] sm:$0xff] }
 0x14a   : > { %v1655_v31 = vpop.f32.mrf.mxu2  ;;  %2204 = vmatpush.msra.mxu3 %v1370_v27  ;;  %v1338_v16 = vld [vmem:[#allocation9 + $0x290] sm:$0xff]  ;;  %v544_v27 = vld [vmem:[#allocation2 + $0x12a] sm:$0xff] }
 0x14b   : > { %v1656_v13 = vadd.f32 %v1655_v31, %v1543_v57  ;;  %v1768_v48 = vpop.f32.mrf.mxu3  ;;  %1978 = vmatpush.msra.mxu1 %v1338_v16  ;;  %v673_v16 = vld [vmem:[#allocation2 + $0x151] sm:$0xff] }
 0x14d   : > { %v1769_v0 = vadd.f32 %v1768_v48, %v1656_v13  ;;  %v671_v48 = vld [vmem:[#allocation2 + $0x139] sm:$0xff] }
 0x14e   : > { %v1548_v36 = vpop.f32.mrf.mxu1  ;;  %v1887_v51 = vpop.f32.mrf.mxu0 }
 0x14f   : > { %v3557_v39 = vadd.f32 %v1881_v23, %v1769_v0  ;;  %1705 = vmatmul.f32.gmra.mxu2 %v540_v58 }
 0x150   : > { %1818 = vmatmul.f32.gmra.mxu3 %v3414_v4  ;;  %v1354_v4 = vld [vmem:[#allocation9 + $0x310] sm:$0xff] }
 0x151   : > { %1595 = vmatmul.f32.gmra.mxu1 %v3342_v19  ;;  %1934 = vmatmul.f32.gmra.mxu0 %v669_v63  ;;  %v1549_v19 = vadd.f32 %v1548_v36, %v3503_v47  ;;  %v1386_v47 = vld [vmem:[#allocation9 + $0x410] sm:$0xff] }
 0x152   : > { %v1658_v20 = vpop.f32.mrf.mxu2  ;;  %2091 = vmatpush.msra.mxu2 %v1354_v4  ;;  %2317 = vmatpush.msra.mxu0 %v1386_v47  ;;  %v543_v36 = vld [vmem:[#allocation2 + $0x122] sm:$0xff]  ;;  %v1337_v4 = vld [vmem:[#allocation9 + $0x288] sm:$0xff] }
 0x153   : > { %v1659_v30 = vadd.f32 %v1658_v20, %v1546_v6  ;;  %v1771_v40 = vpop.f32.mrf.mxu3  ;;  %v607_v6 = vld [vmem:[#allocation2 + $0x138] sm:$0xff]  ;;  %1979 = vmatpush.msra.mxu1 %v1337_v4 }
 0x155   : > { %v1772_v50 = vadd.f32 %v1771_v40, %v1659_v30 }
 0x156   : > { %v1551_v23 = vpop.f32.mrf.mxu1  ;;  %v1890_v62 = vpop.f32.mrf.mxu0 }
 0x157   : > { %v3562_v45 = vadd.f32 %v1884_v43, %v1772_v50  ;;  %1708 = vmatmul.f32.gmra.mxu2 %v541_v49  ;;  %v672_v49 = vld [vmem:[#allocation2 + $0x141] sm:$0xff] }
 0x158   : > { %1821 = vmatmul.f32.gmra.mxu3 %v605_v7  ;;  %v1369_v50 = vld [vmem:[#allocation9 + $0x388] sm:$0xff] }
 0x159   : > { %1598 = vmatmul.f32.gmra.mxu1 %v3360_v38  ;;  %1937 = vmatmul.f32.gmra.mxu0 %v670_v2  ;;  %v1552_v38 = vadd.f32 %v1551_v23, %v3514_v56 }
 0x15a   : > { %v1661_v55 = vpop.f32.mrf.mxu2  ;;  %2205 = vmatpush.msra.mxu3 %v1369_v50 }
 0x15b   : > { %v1662_v28 = vadd.f32 %v1661_v55, %v1549_v19  ;;  %v1774_v12 = vpop.f32.mrf.mxu3  ;;  %v608_v19 = vld [vmem:[#allocation2 + $0x140] sm:$0xff] }
 0x15d   : > { %v1775_v43 = vadd.f32 %v1774_v12, %v1662_v28 }
 0x15e   : > { %v1554_v57 = vpop.f32.mrf.mxu1  ;;  %v1893_v13 = vpop.f32.mrf.mxu0 }
 0x15f   : > { %v3566_v31 = vadd.f32 %v1887_v51, %v1775_v43  ;;  %1711 = vmatmul.f32.gmra.mxu2 %v542_v21  ;;  %v1353_v51 = vld [vmem:[#allocation9 + $0x308] sm:$0xff]  ;;  %v1555_v56 = vadd.f32 %v1554_v57, %v3438_v61 }
 0x160   : > { %1824 = vmatmul.f32.gmra.mxu3 %v606_v32  ;;  %2092 = vmatpush.msra.mxu2 %v1353_v51  ;;  %v1385_v61 = vld [vmem:[#allocation9 + $0x408] sm:$0xff] }
 0x161   : > { %1601 = vmatmul.f32.gmra.mxu1 %v669_v63  ;;  %1940 = vmatmul.f32.gmra.mxu0 %v671_v48 }
 0x162   : > { %v1664_v1 = vpop.f32.mrf.mxu2  ;;  %2318 = vmatpush.msra.mxu0 %v1385_v61 }
 0x163   : > { %v1665_v58 = vadd.f32 %v1664_v1, %v1552_v38  ;;  %v1777_v0 = vpop.f32.mrf.mxu3  ;;  %v609_v38 = vld [vmem:[#allocation2 + $0x150] sm:$0xff] }
 0x165   : > { %v1778_v44 = vadd.f32 %v1777_v0, %v1665_v58  ;;  %v1352_v0 = vld [vmem:[#allocation9 + $0x300] sm:$0xff] }
 0x166   : > { %v1557_v20 = vpop.f32.mrf.mxu1  ;;  %v1896_v40 = vpop.f32.mrf.mxu0  ;;  %2093 = vmatpush.msra.mxu2 %v1352_v0  ;;  %v548_v0 = vld [vmem:[#allocation2 + $0x15a] sm:$0xff] }
 0x167   : > { %v3569_v30 = vadd.f32 %v1890_v62, %v1778_v44  ;;  %1714 = vmatmul.f32.gmra.mxu2 %v543_v36  ;;  %v1558_v21 = vadd.f32 %v1557_v20, %v3445_v22  ;;  %v674_v22 = vld [vmem:[#allocation2 + $0x159] sm:$0xff] }
 0x168   : > { %1827 = vmatmul.f32.gmra.mxu3 %v607_v6  ;;  %v3583_v6 = vld [vmem:[%s3205_s3 + $0xf8] sm:$0xff] }
 0x169   : > { %1604 = vmatmul.f32.gmra.mxu1 %v670_v2  ;;  %1943 = vmatmul.f32.gmra.mxu0 %v672_v49  ;;  %v3575_v2 = vld [vmem:[%s3205_s3 + $0xf0] sm:$0xff]  ;;  %390 = vst [vmem:[#allocation2 + $0x189] sm:$0xff] %v3583_v6 }
 0x16a   : > { %v1667_v63 = vpop.f32.mrf.mxu2  ;;  %389 = vst [vmem:[#allocation2 + $0x181] sm:$0xff] %v3575_v2 }
 0x16b   : > { %v1668_v7 = vadd.f32 %v1667_v63, %v1555_v56  ;;  %v1780_v23 = vpop.f32.mrf.mxu3  ;;  %v546_v56 = vld [vmem:[#allocation2 + $0x142] sm:$0xff] }
 0x16d   : > { %v1781_v62 = vadd.f32 %v1780_v23, %v1668_v7  ;;  %v610_v7 = vld [vmem:[#allocation2 + $0x158] sm:$0xff] }
 0x16e   : > { %v1560_v55 = vpop.f32.mrf.mxu1  ;;  %v1899_v12 = vpop.f32.mrf.mxu0 }
 0x16f   : > { %v3572_v28 = vadd.f32 %v1893_v13, %v1781_v62  ;;  %1717 = vmatmul.f32.gmra.mxu2 %v544_v27  ;;  %v545_v13 = vld [vmem:[#allocation2 + $0x13a] sm:$0xff]  ;;  %v1561_v44 = vadd.f32 %v1560_v55, %v3456_v14  ;;  %v1384_v27 = vld [vmem:[#allocation9 + $0x400] sm:$0xff] }
 0x170   : > { %1830 = vmatmul.f32.gmra.mxu3 %v608_v19  ;;  %2319 = vmatpush.msra.mxu0 %v1384_v27 }
 0x171   : > { %1607 = vmatmul.f32.gmra.mxu1 %v671_v48  ;;  %1946 = vmatmul.f32.gmra.mxu0 %v673_v16  ;;  %v1368_v48 = vld [vmem:[#allocation9 + $0x380] sm:$0xff] }
 0x172   : > { %v1670_v43 = vpop.f32.mrf.mxu2  ;;  %2206 = vmatpush.msra.mxu3 %v1368_v48 }
 0x173   : > { %v1671_v32 = vadd.f32 %v1670_v43, %v1558_v21  ;;  %v1783_v57 = vpop.f32.mrf.mxu3  ;;  %v547_v21 = vld [vmem:[#allocation2 + $0x152] sm:$0xff] }
 0x175   : > { %v1784_v47 = vadd.f32 %v1783_v57, %v1671_v32  ;;  %v611_v32 = vld [vmem:[#allocation2 + $0x168] sm:$0xff] }
 0x176   : > { %v1563_v1 = vpop.f32.mrf.mxu1  ;;  %v1902_v36 = vpop.f32.mrf.mxu0 }
 0x177   : > { %v3579_v58 = vadd.f32 %v1896_v40, %v1784_v47  ;;  %1720 = vmatmul.f32.gmra.mxu2 %v545_v13  ;;  %v1336_v40 = vld [vmem:[#allocation9 + $0x280] sm:$0xff]  ;;  %v1564_v62 = vadd.f32 %v1563_v1, %v3467_v24 }
 0x178   : > { %1833 = vmatmul.f32.gmra.mxu3 %v609_v38  ;;  %1980 = vmatpush.msra.mxu1 %v1336_v40  ;;  %v676_v47 = vld [vmem:[#allocation2 + $0x171] sm:$0xff] }
 0x179   : > { %1610 = vmatmul.f32.gmra.mxu1 %v672_v49  ;;  %1949 = vmatmul.f32.gmra.mxu0 %v674_v22  ;;  %v675_v49 = vld [vmem:[#allocation2 + $0x169] sm:$0xff] }
 0x17a   : > { %v1673_v20 = vpop.f32.mrf.mxu2 }
 0x17b   : > { %v1674_v51 = vadd.f32 %v1673_v20, %v1561_v44  ;;  %v1786_v50 = vpop.f32.mrf.mxu3  ;;  %v612_v44 = vld [vmem:[#allocation2 + $0x170] sm:$0xff] }
 0x17d   : > { %v1787_v63 = vadd.f32 %v1786_v50, %v1674_v51 }
 0x17e   : > { %v1566_v23 = vpop.f32.mrf.mxu1  ;;  %v1905_v14 = vpop.f32.mrf.mxu0 }
 0x17f   : > { %v3586_v4 = vadd.f32 %v1899_v12, %v1787_v63  ;;  %1723 = vmatmul.f32.gmra.mxu2 %v546_v56  ;;  %v1567_v38 = vadd.f32 %v1566_v23, %v3478_v41 }
 0x180   : > { %1836 = vmatmul.f32.gmra.mxu3 %v610_v7  ;;  %v613_v7 = vld [vmem:[#allocation2 + $0x180] sm:$0xff] }
 0x181   : > { %1613 = vmatmul.f32.gmra.mxu1 %v673_v16  ;;  %1952 = vmatmul.f32.gmra.mxu0 %v675_v49 }
 0x182   : > { %v1676_v19 = vpop.f32.mrf.mxu2 }
 0x183   : > { %v1677_v55 = vadd.f32 %v1676_v19, %v1564_v62  ;;  %v1789_v61 = vpop.f32.mrf.mxu3 }
 0x185   : > { %v1790_v43 = vadd.f32 %v1789_v61, %v1677_v55  ;;  %v550_v55 = vld [vmem:[#allocation2 + $0x172] sm:$0xff] }
 0x186   : > { %v1569_v57 = vpop.f32.mrf.mxu1  ;;  %v1908_v12 = vpop.f32.mrf.mxu0 }
 0x187   : > { %v3589_v13 = vadd.f32 %v1902_v36, %v1790_v43  ;;  %1726 = vmatmul.f32.gmra.mxu2 %v547_v21  ;;  %v1570_v50 = vadd.f32 %v1569_v57, %v3489_v60  ;;  %v711_v43 = vld [vmem:[#allocation2 + $0x1a] sm:$0xff] }
 0x188   : > { %1839 = vmatmul.f32.gmra.mxu3 %v611_v32 }
 0x189   : > { %1616 = vmatmul.f32.gmra.mxu1 %v674_v22  ;;  %1955 = vmatmul.f32.gmra.mxu0 %v676_v47  ;;  %v549_v22 = vld [vmem:[#allocation2 + $0x16a] sm:$0xff] }
 0x18a   : > { %v1679_v24 = vpop.f32.mrf.mxu2 }
 0x18b   : > { %v1680_v16 = vadd.f32 %v1679_v24, %v1567_v38  ;;  %v1792_v1 = vpop.f32.mrf.mxu3 }
 0x18d   : > { %v1793_v48 = vadd.f32 %v1792_v1, %v1680_v16  ;;  %v776_v16 = vld [vmem:[#allocation2 + $0x30] sm:$0xff] }
 0x18e   : > { %v1572_v20 = vpop.f32.mrf.mxu1  ;;  %v1911_v36 = vpop.f32.mrf.mxu0  ;;  %v840_v1 = vld [vmem:[#allocation2 + $0x31] sm:$0xff] }
 0x18f   : > { %v3592_v51 = vadd.f32 %v1905_v14, %v1793_v48  ;;  %1729 = vmatmul.f32.gmra.mxu2 %v548_v0  ;;  %v1573_v62 = vadd.f32 %v1572_v20, %v3500_v26  ;;  %v712_v48 = vld [vmem:[#allocation2 + $0x22] sm:$0xff] }
 0x190   : > { %1842 = vmatmul.f32.gmra.mxu3 %v612_v44 }
 0x191   : > { %1619 = vmatmul.f32.gmra.mxu1 %v675_v49  ;;  %1958 = vmatmul.f32.gmra.mxu0 %v3575_v2  ;;  %v614_v2 = vld [vmem:[#allocation2 + $0x188] sm:$0xff] }
 0x192   : > { %v1682_v40 = vpop.f32.mrf.mxu2 }
 0x193   : > { %v1683_v56 = vadd.f32 %v1682_v40, %v1570_v50  ;;  %v1795_v41 = vpop.f32.mrf.mxu3 }
 0x195   : > { %v1796_v63 = vadd.f32 %v1795_v41, %v1683_v56  ;;  %v777_v41 = vld [vmem:[#allocation2 + $0x38] sm:$0xff] }
 0x196   : > { %v1575_v23 = vpop.f32.mrf.mxu1  ;;  %v1914_v14 = vpop.f32.mrf.mxu0 }
 0x197   : > { %v3596_v27 = vadd.f32 %v1908_v12, %v1796_v63  ;;  %1732 = vmatmul.f32.gmra.mxu2 %v549_v22  ;;  %v904_v12 = vld [vmem:[#allocation2 + $0x32] sm:$0xff]  ;;  %v1576_v38 = vadd.f32 %v1575_v23, %v3511_v18 }
 0x198   : > { %1845 = vmatmul.f32.gmra.mxu3 %v613_v7  ;;  %v841_v63 = vld [vmem:[#allocation2 + $0x39] sm:$0xff] }
 0x199   : > { %1622 = vmatmul.f32.gmra.mxu1 %v676_v47  ;;  %1961 = vmatmul.f32.gmra.mxu0 %v3583_v6 }
 0x19a   : > { %v1685_v19 = vpop.f32.mrf.mxu2 }
 0x19b   : > { %v1686_v60 = vadd.f32 %v1685_v19, %v1573_v62  ;;  %v1798_v49 = vpop.f32.mrf.mxu3  ;;  %v906_v62 = vld [vmem:[#allocation2 + $0x4a] sm:$0xff] }
 0x19d   : > { %v1799_v61 = vadd.f32 %v1798_v49, %v1686_v60 }
 0x19e   : > { %v1578_v21 = vpop.f32.mrf.mxu1  ;;  %v1917_v57 = vpop.f32.mrf.mxu0 }
 0x19f   : > { %v3600_v32 = vadd.f32 %v1911_v36, %v1799_v61  ;;  %1735 = vmatmul.f32.gmra.mxu2 %v550_v55  ;;  %v905_v36 = vld [vmem:[#allocation2 + $0x3a] sm:$0xff]  ;;  %v1579_v50 = vadd.f32 %v1578_v21, %v3451_v52  ;;  %v778_v55 = vld [vmem:[#allocation2 + $0x48] sm:$0xff] }
 0x1a0   : > { %1848 = vmatmul.f32.gmra.mxu3 %v614_v2  ;;  %v842_v2 = vld [vmem:[#allocation2 + $0x49] sm:$0xff] }
 0x1a1   : > { %1981 = vmatmul.f32.vlgmr.msra.gmra.mxu1 %v711_v43  ;;  %2320 = vmatmul.f32.vlgmr.msra.gmra.mxu0 %v904_v12 }
 0x1a2   : > { %v1688_v26 = vpop.f32.mrf.mxu2 }
 0x1a3   : > { %v1689_v47 = vadd.f32 %v1688_v26, %v1576_v38  ;;  %v1801_v24 = vpop.f32.mrf.mxu3  ;;  %v907_v38 = vld [vmem:[#allocation2 + $0x52] sm:$0xff] }
 0x1a5   : > { %v1802_v6 = vadd.f32 %v1801_v24, %v1689_v47  ;;  %v779_v24 = vld [vmem:[#allocation2 + $0x50] sm:$0xff] }
 0x1a6   : > { %v1581_v0 = vpop.f32.mrf.mxu1  ;;  %v1920_v20 = vpop.f32.mrf.mxu0 }
 0x1a7   : > { %v3603_v44 = vadd.f32 %v1914_v14, %v1802_v6  ;;  %2094 = vmatmul.f32.vlgmr.msra.gmra.mxu2 %v776_v16  ;;  %v1582_v19 = vadd.f32 %v1581_v0, %v3462_v25  ;;  %v843_v6 = vld [vmem:[#allocation2 + $0x51] sm:$0xff] }
 0x1a8   : > { %2207 = vmatmul.f32.vlgmr.msra.gmra.mxu3 %v840_v1 }
 0x1a9   : > { %1984 = vmatmul.f32.gmra.mxu1 %v712_v48  ;;  %2323 = vmatmul.f32.gmra.mxu0 %v905_v36 }
 0x1aa   : > { %v1691_v18 = vpop.f32.mrf.mxu2 }
 0x1ab   : > { %v1692_v40 = vadd.f32 %v1691_v18, %v1579_v50  ;;  %v1804_v56 = vpop.f32.mrf.mxu3 }
 0x1ad   : > { %v1805_v22 = vadd.f32 %v1804_v56, %v1692_v40  ;;  %v780_v40 = vld [vmem:[#allocation2 + $0x60] sm:$0xff] }
 0x1ae   : > { %v1584_v7 = vpop.f32.mrf.mxu1  ;;  %v1923_v14 = vpop.f32.mrf.mxu0 }
 0x1af   : > { %v3606_v23 = vadd.f32 %v1917_v57, %v1805_v22  ;;  %2097 = vmatmul.f32.gmra.mxu2 %v777_v41  ;;  %v1585_v26 = vadd.f32 %v1584_v7, %v3473_v34  ;;  %v844_v41 = vld [vmem:[#allocation2 + $0x61] sm:$0xff] }
 0x1b0   : > { %2210 = vmatmul.f32.gmra.mxu3 %v841_v63 }
 0x1b1   : > { %1987 = vmatmul.f32.gmra.mxu1 %v904_v12  ;;  %2326 = vmatmul.f32.gmra.mxu0 %v906_v62 }
 0x1b2   : > { %v1694_v60 = vpop.f32.mrf.mxu2 }
 0x1b3   : > { %v1695_v52 = vadd.f32 %v1694_v60, %v1582_v19  ;;  %v1807_v49 = vpop.f32.mrf.mxu3 }
 0x1b5   : > { %v1808_v61 = vadd.f32 %v1807_v49, %v1695_v52  ;;  %v781_v52 = vld [vmem:[#allocation2 + $0x68] sm:$0xff] }
 0x1b6   : > { %v1587_v21 = vpop.f32.mrf.mxu1  ;;  %v1926_v57 = vpop.f32.mrf.mxu0 }
 0x1b7   : > { %v3609_v43 = vadd.f32 %v1920_v20, %v1808_v61  ;;  %2100 = vmatmul.f32.gmra.mxu2 %v778_v55  ;;  %v908_v20 = vld [vmem:[#allocation2 + $0x62] sm:$0xff]  ;;  %v1588_v50 = vadd.f32 %v1587_v21, %v3484_v42 }
 0x1b8   : > { %2213 = vmatmul.f32.gmra.mxu3 %v842_v2  ;;  %v845_v55 = vld [vmem:[#allocation2 + $0x69] sm:$0xff] }
 0x1b9   : > { %1990 = vmatmul.f32.gmra.mxu1 %v905_v36  ;;  %2329 = vmatmul.f32.gmra.mxu0 %v907_v38 }
 0x1ba   : > { %v1697_v47 = vpop.f32.mrf.mxu2 }
 0x1bb   : > { %v1698_v25 = vadd.f32 %v1697_v47, %v1585_v26  ;;  %v1810_v12 = vpop.f32.mrf.mxu3 }
 0x1bd   : > { %v1811_v16 = vadd.f32 %v1810_v12, %v1698_v25  ;;  %v782_v25 = vld [vmem:[#allocation2 + $0x78] sm:$0xff] }
 0x1be   : > { %v1590_v1 = vpop.f32.mrf.mxu1  ;;  %v1929_v48 = vpop.f32.mrf.mxu0 }
 0x1bf   : > { %v3612_v0 = vadd.f32 %v1923_v14, %v1811_v16  ;;  %2103 = vmatmul.f32.gmra.mxu2 %v779_v24  ;;  %v909_v14 = vld [vmem:[#allocation2 + $0x6a] sm:$0xff]  ;;  %v1591_v19 = vadd.f32 %v1590_v1, %v3495_v54  ;;  %v846_v24 = vld [vmem:[#allocation2 + $0x79] sm:$0xff] }
 0x1c0   : > { %2216 = vmatmul.f32.gmra.mxu3 %v843_v6 }
 0x1c1   : > { %1993 = vmatmul.f32.gmra.mxu1 %v906_v62  ;;  %2332 = vmatmul.f32.gmra.mxu0 %v908_v20 }
 0x1c2   : > { %v1700_v18 = vpop.f32.mrf.mxu2 }
 0x1c3   : > { %v1701_v34 = vadd.f32 %v1700_v18, %v1588_v50  ;;  %v1813_v36 = vpop.f32.mrf.mxu3 }
 0x1c5   : > { %v1814_v56 = vadd.f32 %v1813_v36, %v1701_v34  ;;  %v783_v34 = vld [vmem:[#allocation2 + $0x80] sm:$0xff] }
 0x1c6   : > { %v1593_v22 = vpop.f32.mrf.mxu1  ;;  %v1932_v7 = vpop.f32.mrf.mxu0 }
 0x1c7   : > { %v3615_v63 = vadd.f32 %v1926_v57, %v1814_v56  ;;  %2106 = vmatmul.f32.gmra.mxu2 %v780_v40  ;;  %v910_v57 = vld [vmem:[#allocation2 + $0x7a] sm:$0xff]  ;;  %v1594_v26 = vadd.f32 %v1593_v22, %v3506_v3 }
 0x1c8   : > { %2219 = vmatmul.f32.gmra.mxu3 %v844_v41  ;;  %v847_v40 = vld [vmem:[#allocation2 + $0x81] sm:$0xff] }
 0x1c9   : > { %1996 = vmatmul.f32.gmra.mxu1 %v907_v38  ;;  %2335 = vmatmul.f32.gmra.mxu0 %v909_v14 }
 0x1ca   : > { %v1703_v60 = vpop.f32.mrf.mxu2 }
 0x1cb   : > { %v1704_v42 = vadd.f32 %v1703_v60, %v1591_v19  ;;  %v1816_v62 = vpop.f32.mrf.mxu3 }
 0x1cd   : > { %v1817_v49 = vadd.f32 %v1816_v62, %v1704_v42  ;;  %v784_v42 = vld [vmem:[#allocation2 + $0x90] sm:$0xff] }
 0x1ce   : > { %v1596_v61 = vpop.f32.mrf.mxu1  ;;  %v1935_v21 = vpop.f32.mrf.mxu0 }
 0x1cf   : > { %v3618_v2 = vadd.f32 %v1929_v48, %v1817_v49  ;;  %2109 = vmatmul.f32.gmra.mxu2 %v781_v52  ;;  %v911_v48 = vld [vmem:[#allocation2 + $0x82] sm:$0xff]  ;;  %v1597_v50 = vadd.f32 %v1596_v61, %v3517_v15  ;;  %v848_v52 = vld [vmem:[#allocation2 + $0x91] sm:$0xff] }
 0x1d0   : > { %2222 = vmatmul.f32.gmra.mxu3 %v845_v55 }
 0x1d1   : > { %1999 = vmatmul.f32.gmra.mxu1 %v908_v20  ;;  %2338 = vmatmul.f32.gmra.mxu0 %v910_v57 }
 0x1d2   : > { %v1706_v47 = vpop.f32.mrf.mxu2 }
 0x1d3   : > { %v1707_v54 = vadd.f32 %v1706_v47, %v1594_v26  ;;  %v1819_v38 = vpop.f32.mrf.mxu3 }
 0x1d5   : > { %v1820_v12 = vadd.f32 %v1819_v38, %v1707_v54  ;;  %v785_v54 = vld [vmem:[#allocation2 + $0x98] sm:$0xff] }
 0x1d6   : > { %v1599_v16 = vpop.f32.mrf.mxu1  ;;  %v1938_v1 = vpop.f32.mrf.mxu0 }
 0x1d7   : > { %v3621_v6 = vadd.f32 %v1932_v7, %v1820_v12  ;;  %2112 = vmatmul.f32.gmra.mxu2 %v782_v25  ;;  %v912_v7 = vld [vmem:[#allocation2 + $0x92] sm:$0xff]  ;;  %v1600_v19 = vadd.f32 %v1599_v16, %v3524_v37 }
 0x1d8   : > { %2225 = vmatmul.f32.gmra.mxu3 %v846_v24  ;;  %v849_v25 = vld [vmem:[#allocation2 + $0x99] sm:$0xff] }
 0x1d9   : > { %2002 = vmatmul.f32.gmra.mxu1 %v909_v14  ;;  %2341 = vmatmul.f32.gmra.mxu0 %v911_v48 }
 0x1da   : > { %v1709_v18 = vpop.f32.mrf.mxu2 }
 0x1db   : > { %v1710_v3 = vadd.f32 %v1709_v18, %v1597_v50  ;;  %v1822_v20 = vpop.f32.mrf.mxu3 }
 0x1dd   : > { %v1823_v36 = vadd.f32 %v1822_v20, %v1710_v3  ;;  %v786_v3 = vld [vmem:[#allocation2 + $0xa8] sm:$0xff] }
 0x1de   : > { %v1602_v56 = vpop.f32.mrf.mxu1  ;;  %v1941_v22 = vpop.f32.mrf.mxu0 }
 0x1df   : > { %v3624_v41 = vadd.f32 %v1935_v21, %v1823_v36  ;;  %2115 = vmatmul.f32.gmra.mxu2 %v783_v34  ;;  %v913_v21 = vld [vmem:[#allocation2 + $0x9a] sm:$0xff]  ;;  %v1603_v26 = vadd.f32 %v1602_v56, %v3453_v11  ;;  %v850_v34 = vld [vmem:[#allocation2 + $0xa9] sm:$0xff] }
 0x1e0   : > { %2228 = vmatmul.f32.gmra.mxu3 %v847_v40 }
 0x1e1   : > { %2005 = vmatmul.f32.gmra.mxu1 %v910_v57  ;;  %2344 = vmatmul.f32.gmra.mxu0 %v912_v7 }
 0x1e2   : > { %v1712_v60 = vpop.f32.mrf.mxu2 }
 0x1e3   : > { %v1713_v15 = vadd.f32 %v1712_v60, %v1600_v19  ;;  %v1825_v14 = vpop.f32.mrf.mxu3 }
 0x1e5   : > { %v1826_v62 = vadd.f32 %v1825_v14, %v1713_v15  ;;  %v787_v15 = vld [vmem:[#allocation2 + $0xb0] sm:$0xff] }
 0x1e6   : > { %v1605_v49 = vpop.f32.mrf.mxu1  ;;  %v1944_v61 = vpop.f32.mrf.mxu0 }
 0x1e7   : > { %v3627_v55 = vadd.f32 %v1938_v1, %v1826_v62  ;;  %2118 = vmatmul.f32.gmra.mxu2 %v784_v42  ;;  %v914_v1 = vld [vmem:[#allocation2 + $0xaa] sm:$0xff]  ;;  %v1606_v50 = vadd.f32 %v1605_v49, %v3464_v17 }
 0x1e8   : > { %2231 = vmatmul.f32.gmra.mxu3 %v848_v52  ;;  %v851_v42 = vld [vmem:[#allocation2 + $0xb1] sm:$0xff] }
 0x1e9   : > { %2008 = vmatmul.f32.gmra.mxu1 %v911_v48  ;;  %2347 = vmatmul.f32.gmra.mxu0 %v913_v21 }
 0x1ea   : > { %v1715_v47 = vpop.f32.mrf.mxu2 }
 0x1eb   : > { %v1716_v37 = vadd.f32 %v1715_v47, %v1603_v26  ;;  %v1828_v57 = vpop.f32.mrf.mxu3 }
 0x1ed   : > { %v1829_v38 = vadd.f32 %v1828_v57, %v1716_v37  ;;  %v788_v37 = vld [vmem:[#allocation2 + $0xc0] sm:$0xff] }
 0x1ee   : > { %v1608_v12 = vpop.f32.mrf.mxu1  ;;  %v1947_v16 = vpop.f32.mrf.mxu0 }
 0x1ef   : > { %v3630_v24 = vadd.f32 %v1941_v22, %v1829_v38  ;;  %2121 = vmatmul.f32.gmra.mxu2 %v785_v54  ;;  %v915_v22 = vld [vmem:[#allocation2 + $0xb2] sm:$0xff]  ;;  %v1609_v19 = vadd.f32 %v1608_v12, %v3475_v35  ;;  %v852_v54 = vld [vmem:[#allocation2 + $0xc1] sm:$0xff] }
 0x1f0   : > { %2234 = vmatmul.f32.gmra.mxu3 %v849_v25 }
 0x1f1   : > { %2011 = vmatmul.f32.gmra.mxu1 %v912_v7  ;;  %2350 = vmatmul.f32.gmra.mxu0 %v914_v1 }
 0x1f2   : > { %v1718_v18 = vpop.f32.mrf.mxu2 }
 0x1f3   : > { %v1719_v11 = vadd.f32 %v1718_v18, %v1606_v50  ;;  %v1831_v48 = vpop.f32.mrf.mxu3 }
 0x1f5   : > { %v1832_v20 = vadd.f32 %v1831_v48, %v1719_v11  ;;  %v789_v11 = vld [vmem:[#allocation2 + $0xc8] sm:$0xff] }
 0x1f6   : > { %v1611_v36 = vpop.f32.mrf.mxu1  ;;  %v1950_v56 = vpop.f32.mrf.mxu0 }
 0x1f7   : > { %v3633_v40 = vadd.f32 %v1944_v61, %v1832_v20  ;;  %2124 = vmatmul.f32.gmra.mxu2 %v786_v3  ;;  %v916_v61 = vld [vmem:[#allocation2 + $0xc2] sm:$0xff]  ;;  %v1612_v26 = vadd.f32 %v1611_v36, %v3486_v8 }
 0x1f8   : > { %2237 = vmatmul.f32.gmra.mxu3 %v850_v34  ;;  %v853_v3 = vld [vmem:[#allocation2 + $0xc9] sm:$0xff] }
 0x1f9   : > { %2014 = vmatmul.f32.gmra.mxu1 %v913_v21  ;;  %2353 = vmatmul.f32.gmra.mxu0 %v915_v22 }
 0x1fa   : > { %v1721_v60 = vpop.f32.mrf.mxu2 }
 0x1fb   : > { %v1722_v17 = vadd.f32 %v1721_v60, %v1609_v19  ;;  %v1834_v7 = vpop.f32.mrf.mxu3 }
 0x1fd   : > { %v1835_v14 = vadd.f32 %v1834_v7, %v1722_v17  ;;  %v790_v17 = vld [vmem:[#allocation2 + $0xd8] sm:$0xff] }
 0x1fe   : > { %v1614_v62 = vpop.f32.mrf.mxu1  ;;  %v1953_v49 = vpop.f32.mrf.mxu0 }
 0x1ff   : > { %v3636_v52 = vadd.f32 %v1947_v16, %v1835_v14  ;;  %2127 = vmatmul.f32.gmra.mxu2 %v787_v15  ;;  %v917_v16 = vld [vmem:[#allocation2 + $0xca] sm:$0xff]  ;;  %v1615_v50 = vadd.f32 %v1614_v62, %v3497_v9  ;;  %v854_v15 = vld [vmem:[#allocation2 + $0xd9] sm:$0xff] }
 0x200   : > { %2240 = vmatmul.f32.gmra.mxu3 %v851_v42 }
 0x201   : > { %2017 = vmatmul.f32.gmra.mxu1 %v914_v1  ;;  %2356 = vmatmul.f32.gmra.mxu0 %v916_v61 }
 0x202   : > { %v1724_v47 = vpop.f32.mrf.mxu2 }
 0x203   : > { %v1725_v35 = vadd.f32 %v1724_v47, %v1612_v26  ;;  %v1837_v21 = vpop.f32.mrf.mxu3 }
 0x205   : > { %v1838_v57 = vadd.f32 %v1837_v21, %v1725_v35  ;;  %v791_v35 = vld [vmem:[#allocation2 + $0xe0] sm:$0xff] }
 0x206   : > { %v1617_v38 = vpop.f32.mrf.mxu1  ;;  %v1956_v12 = vpop.f32.mrf.mxu0 }
 0x207   : > { %v3639_v25 = vadd.f32 %v1950_v56, %v1838_v57  ;;  %2130 = vmatmul.f32.gmra.mxu2 %v788_v37  ;;  %v918_v56 = vld [vmem:[#allocation2 + $0xda] sm:$0xff]  ;;  %v1618_v19 = vadd.f32 %v1617_v38, %v3508_v59 }
 0x208   : > { %2243 = vmatmul.f32.gmra.mxu3 %v852_v54  ;;  %v855_v37 = vld [vmem:[#allocation2 + $0xe1] sm:$0xff] }
 0x209   : > { %2020 = vmatmul.f32.gmra.mxu1 %v915_v22  ;;  %2359 = vmatmul.f32.gmra.mxu0 %v917_v16 }
 0x20a   : > { %v1727_v18 = vpop.f32.mrf.mxu2 }
 0x20b   : > { %v1728_v8 = vadd.f32 %v1727_v18, %v1615_v50  ;;  %v1840_v1 = vpop.f32.mrf.mxu3 }
 0x20d   : > { %v1841_v48 = vadd.f32 %v1840_v1, %v1728_v8  ;;  %v792_v8 = vld [vmem:[#allocation2 + $0xf0] sm:$0xff] }
 0x20e   : > { %v1620_v20 = vpop.f32.mrf.mxu1  ;;  %v1959_v36 = vpop.f32.mrf.mxu0 }
 0x20f   : > { %v3642_v34 = vadd.f32 %v1953_v49, %v1841_v48  ;;  %2133 = vmatmul.f32.gmra.mxu2 %v789_v11  ;;  %v919_v49 = vld [vmem:[#allocation2 + $0xe2] sm:$0xff]  ;;  %v1621_v26 = vadd.f32 %v1620_v20, %v3519_v5  ;;  %v856_v11 = vld [vmem:[#allocation2 + $0xf1] sm:$0xff] }
 0x210   : > { %2246 = vmatmul.f32.gmra.mxu3 %v853_v3 }
 0x211   : > { %2023 = vmatmul.f32.gmra.mxu1 %v916_v61  ;;  %2362 = vmatmul.f32.gmra.mxu0 %v918_v56 }
 0x212   : > { %v1730_v60 = vpop.f32.mrf.mxu2 }
 0x213   : > { %v1731_v9 = vadd.f32 %v1730_v60, %v1618_v19  ;;  %v1843_v22 = vpop.f32.mrf.mxu3 }
 0x215   : > { %v1844_v7 = vadd.f32 %v1843_v22, %v1731_v9  ;;  %v793_v9 = vld [vmem:[#allocation2 + $0xf8] sm:$0xff] }
 0x216   : > { %v1623_v14 = vpop.f32.mrf.mxu1  ;;  %v1962_v62 = vpop.f32.mrf.mxu0 }
 0x217   : > { %v3645_v42 = vadd.f32 %v1956_v12, %v1844_v7  ;;  %2136 = vmatmul.f32.gmra.mxu2 %v790_v17  ;;  %v920_v12 = vld [vmem:[#allocation2 + $0xf2] sm:$0xff]  ;;  %v1624_v50 = vadd.f32 %v1623_v14, %v3526_v33 }
 0x218   : > { %2249 = vmatmul.f32.gmra.mxu3 %v854_v15  ;;  %v857_v17 = vld [vmem:[#allocation2 + $0xf9] sm:$0xff] }
 0x219   : > { %2026 = vmatmul.f32.gmra.mxu1 %v917_v16  ;;  %2365 = vmatmul.f32.gmra.mxu0 %v919_v49 }
 0x21a   : > { %v1733_v47 = vpop.f32.mrf.mxu2 }
 0x21b   : > { %v1734_v59 = vadd.f32 %v1733_v47, %v1621_v26  ;;  %v1846_v61 = vpop.f32.mrf.mxu3 }
 0x21d   : > { %v1847_v21 = vadd.f32 %v1846_v61, %v1734_v59  ;;  %v794_v59 = vld [vmem:[#allocation2 + $0x108] sm:$0xff] }
 0x21e   : > { %v1982_v57 = vpop.f32.mrf.mxu1  ;;  %v2321_v38 = vpop.f32.mrf.mxu0 }
 0x21f   : > { %v3648_v54 = vadd.f32 %v1959_v36, %v1847_v21  ;;  %2139 = vmatmul.f32.gmra.mxu2 %v791_v35  ;;  %v921_v36 = vld [vmem:[#allocation2 + $0xfa] sm:$0xff]  ;;  %v1983_v19 = vadd.f32 %v1982_v57, %v3533_v10  ;;  %v858_v35 = vld [vmem:[#allocation2 + $0x109] sm:$0xff] }
 0x220   : > { %2252 = vmatmul.f32.gmra.mxu3 %v855_v37 }
 0x221   : > { %2029 = vmatmul.f32.gmra.mxu1 %v918_v56  ;;  %2368 = vmatmul.f32.gmra.mxu0 %v920_v12 }
 0x222   : > { %v1736_v18 = vpop.f32.mrf.mxu2 }
 0x223   : > { %v1737_v5 = vadd.f32 %v1736_v18, %v1624_v50  ;;  %v1849_v16 = vpop.f32.mrf.mxu3 }
 0x225   : > { %v1850_v1 = vadd.f32 %v1849_v16, %v1737_v5 }
 0x226   : > { %v1985_v48 = vpop.f32.mrf.mxu1  ;;  %v2324_v20 = vpop.f32.mrf.mxu0 }
 0x227   : > { %v3651_v3 = vadd.f32 %v1962_v62, %v1850_v1  ;;  %2142 = vmatmul.f32.gmra.mxu2 %v792_v8  ;;  %v922_v62 = vld [vmem:[#allocation2 + $0x10a] sm:$0xff]  ;;  %v1986_v26 = vadd.f32 %v1985_v48, %v3539_v46 }
 0x228   : > { %2255 = vmatmul.f32.gmra.mxu3 %v856_v11  ;;  %v795_v11 = vld [vmem:[#allocation2 + $0x110] sm:$0xff] }
 0x229   : > { %2032 = vmatmul.f32.gmra.mxu1 %v919_v49  ;;  %2371 = vmatmul.f32.gmra.mxu0 %v921_v36 }
 0x22a   : > { %v2095_v33 = vpop.f32.mrf.mxu2 }
 0x22b   : > { %v2096_v56 = vadd.f32 %v2095_v33, %v1983_v19  ;;  %v2208_v60 = vpop.f32.mrf.mxu3 }
 0x22d   : > { %v2209_v22 = vadd.f32 %v2208_v60, %v2096_v56  ;;  %v924_v56 = vld [vmem:[#allocation2 + $0x122] sm:$0xff] }
 0x22e   : > { %v1988_v7 = vpop.f32.mrf.mxu1  ;;  %v2327_v14 = vpop.f32.mrf.mxu0 }
 0x22f   : > { %v2322_v15 = vadd.f32 %v2321_v38, %v2209_v22  ;;  %2145 = vmatmul.f32.gmra.mxu2 %v793_v9  ;;  %v1989_v57 = vadd.f32 %v1988_v7, %v3545_v53  ;;  %v923_v38 = vld [vmem:[#allocation2 + $0x112] sm:$0xff] }
 0x230   : > { %2258 = vmatmul.f32.gmra.mxu3 %v857_v17 }
 0x231   : > { %2417 = vst [vmem:[%s3657_s1] sm:$0xff] %v2322_v15  ;;  %2035 = vmatmul.f32.gmra.mxu1 %v920_v12  ;;  %2374 = vmatmul.f32.gmra.mxu0 %v922_v62  ;;  %v2487_v50 = vmul.f32 %v2322_v15, %v2322_v15 }
 0x232   : > { %v2098_v10 = vpop.f32.mrf.mxu2 }
 0x233   : > { %v2099_v49 = vadd.f32 %v2098_v10, %v1986_v26  ;;  %v2211_v47 = vpop.f32.mrf.mxu3  ;;  %v796_v26 = vld [vmem:[#allocation2 + $0x120] sm:$0xff] }
 0x235   : > { %v2212_v61 = vadd.f32 %v2211_v47, %v2099_v49  ;;  %v860_v49 = vld [vmem:[#allocation2 + $0x121] sm:$0xff] }
 0x236   : > { %v1991_v21 = vpop.f32.mrf.mxu1  ;;  %v2330_v46 = vpop.f32.mrf.mxu0 }
 0x237   : > { %v2325_v37 = vadd.f32 %v2324_v20, %v2212_v61  ;;  %2148 = vmatmul.f32.gmra.mxu2 %v794_v59  ;;  %v859_v20 = vld [vmem:[#allocation2 + $0x111] sm:$0xff]  ;;  %v1992_v60 = vadd.f32 %v1991_v21, %v3551_v29 }
 0x238   : > { %2261 = vmatmul.f32.gmra.mxu3 %v858_v35  ;;  %v925_v61 = vld [vmem:[#allocation2 + $0x12a] sm:$0xff] }
 0x239   : > { %2418 = vst [vmem:[%s3657_s1 + $0x8] sm:$0xff] %v2325_v37  ;;  %v2449_v18 = vadd.f32 %v2325_v37, %v2322_v15  ;;  %v2488_v12 = vmul.f32 %v2325_v37, %v2325_v37  ;;  %2038 = vmatmul.f32.gmra.mxu1 %v921_v36  ;;  %2377 = vmatmul.f32.gmra.mxu0 %v923_v38 }
 0x23a   : > { %v2101_v5 = vpop.f32.mrf.mxu2 }
 0x23b   : > { %v2519_v16 = vadd.f32 %v2488_v12, %v2487_v50  ;;  %v2102_v8 = vadd.f32 %v2101_v5, %v1989_v57  ;;  %v2214_v1 = vpop.f32.mrf.mxu3  ;;  %v861_v5 = vld [vmem:[#allocation2 + $0x129] sm:$0xff] }
 0x23d   : > { %v2215_v48 = vadd.f32 %v2214_v1, %v2102_v8  ;;  %v926_v1 = vld [vmem:[#allocation2 + $0x13a] sm:$0xff] }
 0x23e   : > { %v1994_v19 = vpop.f32.mrf.mxu1  ;;  %v2333_v53 = vpop.f32.mrf.mxu0 }
 0x23f   : > { %v2328_v33 = vadd.f32 %v2327_v14, %v2215_v48  ;;  %2151 = vmatmul.f32.gmra.mxu2 %v795_v11  ;;  %v1995_v29 = vadd.f32 %v1994_v19, %v3557_v39 }
 0x240   : > { %2264 = vmatmul.f32.gmra.mxu3 %v859_v20 }
 0x241   : > { %2419 = vst [vmem:[%s3657_s1 + $0x10] sm:$0xff] %v2328_v33  ;;  %v2450_v9 = vadd.f32 %v2449_v18, %v2328_v33  ;;  %v2489_v36 = vmul.f32 %v2328_v33, %v2328_v33  ;;  %2041 = vmatmul.f32.gmra.mxu1 %v922_v62  ;;  %2380 = vmatmul.f32.gmra.mxu0 %v924_v56  ;;  %v797_v18 = vld [vmem:[#allocation2 + $0x128] sm:$0xff] }
 0x242   : > { %v2104_v22 = vpop.f32.mrf.mxu2 }
 0x243   : > { %v2520_v17 = vadd.f32 %v2519_v16, %v2489_v36  ;;  %v2105_v7 = vadd.f32 %v2104_v22, %v1992_v60  ;;  %v2217_v15 = vpop.f32.mrf.mxu3  ;;  %v798_v60 = vld [vmem:[#allocation2 + $0x138] sm:$0xff] }
 0x244   : > { %v862_v36 = vld [vmem:[#allocation2 + $0x139] sm:$0xff] }
 0x245   : > { %v2218_v10 = vadd.f32 %v2217_v15, %v2105_v7  ;;  %v927_v7 = vld [vmem:[#allocation2 + $0x142] sm:$0xff] }
 0x246   : > { %v1997_v14 = vpop.f32.mrf.mxu1  ;;  %v2336_v59 = vpop.f32.mrf.mxu0 }
 0x247   : > { %v2331_v47 = vadd.f32 %v2330_v46, %v2218_v10  ;;  %2154 = vmatmul.f32.gmra.mxu2 %v796_v26  ;;  %v1998_v39 = vadd.f32 %v1997_v14, %v3562_v45 }
 0x248   : > { %2267 = vmatmul.f32.gmra.mxu3 %v860_v49 }
 0x249   : > { %2420 = vst [vmem:[%s3657_s1 + $0x18] sm:$0xff] %v2331_v47  ;;  %v2451_v35 = vadd.f32 %v2450_v9, %v2331_v47  ;;  %v2490_v62 = vmul.f32 %v2331_v47, %v2331_v47  ;;  %2044 = vmatmul.f32.gmra.mxu1 %v923_v38  ;;  %2383 = vmatmul.f32.gmra.mxu0 %v925_v61  ;;  %v799_v47 = vld [vmem:[#allocation2 + $0x140] sm:$0xff] }
 0x24a   : > { %v2107_v21 = vpop.f32.mrf.mxu2 }
 0x24b   : > { %v2521_v37 = vadd.f32 %v2520_v17, %v2490_v62  ;;  %v2108_v57 = vadd.f32 %v2107_v21, %v1995_v29  ;;  %v2220_v50 = vpop.f32.mrf.mxu3 }
 0x24d   : > { %v2221_v12 = vadd.f32 %v2220_v50, %v2108_v57 }
 0x24e   : > { %v2000_v46 = vpop.f32.mrf.mxu1  ;;  %v2339_v8 = vpop.f32.mrf.mxu0 }
 0x24f   : > { %v2334_v16 = vadd.f32 %v2333_v53, %v2221_v12  ;;  %2157 = vmatmul.f32.gmra.mxu2 %v797_v18  ;;  %v2001_v45 = vadd.f32 %v2000_v46, %v3566_v31  ;;  %v800_v46 = vld [vmem:[#allocation2 + $0x150] sm:$0xff] }
 0x250   : > { %2270 = vmatmul.f32.gmra.mxu3 %v861_v5 }
 0x251   : > { %2421 = vst [vmem:[%s3657_s1 + $0x20] sm:$0xff] %v2334_v16  ;;  %v2452_v11 = vadd.f32 %v2451_v35, %v2334_v16  ;;  %v2491_v38 = vmul.f32 %v2334_v16, %v2334_v16  ;;  %2047 = vmatmul.f32.gmra.mxu1 %v924_v56  ;;  %2386 = vmatmul.f32.gmra.mxu0 %v926_v1  ;;  %v863_v35 = vld [vmem:[#allocation2 + $0x141] sm:$0xff] }
 0x252   : > { %v2110_v48 = vpop.f32.mrf.mxu2 }
 0x253   : > { %v2522_v20 = vadd.f32 %v2521_v37, %v2491_v38  ;;  %v2111_v19 = vadd.f32 %v2110_v48, %v1998_v39  ;;  %v2223_v33 = vpop.f32.mrf.mxu3  ;;  %v928_v37 = vld [vmem:[#allocation2 + $0x152] sm:$0xff]  ;;  %v929_v48 = vld [vmem:[#allocation2 + $0x15a] sm:$0xff] }
 0x254   : > { %v864_v39 = vld [vmem:[#allocation2 + $0x151] sm:$0xff] }
 0x255   : > { %v2224_v9 = vadd.f32 %v2223_v33, %v2111_v19 }
 0x256   : > { %v2003_v53 = vpop.f32.mrf.mxu1  ;;  %v2342_v17 = vpop.f32.mrf.mxu0 }
 0x257   : > { %v2337_v22 = vadd.f32 %v2336_v59, %v2224_v9  ;;  %2160 = vmatmul.f32.gmra.mxu2 %v798_v60  ;;  %v2004_v31 = vadd.f32 %v2003_v53, %v3569_v30 }
 0x258   : > { %2273 = vmatmul.f32.gmra.mxu3 %v862_v36  ;;  %v801_v36 = vld [vmem:[#allocation2 + $0x158] sm:$0xff] }
 0x259   : > { %2422 = vst [vmem:[%s3657_s1 + $0x28] sm:$0xff] %v2337_v22  ;;  %v2453_v15 = vadd.f32 %v2452_v11, %v2337_v22  ;;  %v2492_v56 = vmul.f32 %v2337_v22, %v2337_v22  ;;  %2050 = vmatmul.f32.gmra.mxu1 %v925_v61  ;;  %2389 = vmatmul.f32.gmra.mxu0 %v927_v7  ;;  %v865_v22 = vld [vmem:[#allocation2 + $0x159] sm:$0xff] }
 0x25a   : > { %v2113_v26 = vpop.f32.mrf.mxu2 }
 0x25b   : > { %v2523_v10 = vadd.f32 %v2522_v20, %v2492_v56  ;;  %v2114_v49 = vadd.f32 %v2113_v26, %v2001_v45  ;;  %v2226_v14 = vpop.f32.mrf.mxu3  ;;  %v930_v56 = vld [vmem:[#allocation2 + $0x16a] sm:$0xff] }
 0x25d   : > { %v2227_v29 = vadd.f32 %v2226_v14, %v2114_v49 }
 0x25e   : > { %v2006_v59 = vpop.f32.mrf.mxu1  ;;  %v2345_v21 = vpop.f32.mrf.mxu0 }
 0x25f   : > { %v2340_v62 = vadd.f32 %v2339_v8, %v2227_v29  ;;  %2163 = vmatmul.f32.gmra.mxu2 %v799_v47  ;;  %v2007_v30 = vadd.f32 %v2006_v59, %v3572_v28  ;;  %v802_v29 = vld [vmem:[#allocation2 + $0x168] sm:$0xff] }
 0x260   : > { %2276 = vmatmul.f32.gmra.mxu3 %v863_v35  ;;  %v866_v59 = vld [vmem:[#allocation2 + $0x169] sm:$0xff] }
 0x261   : > { %2423 = vst [vmem:[%s3657_s1 + $0x30] sm:$0xff] %v2340_v62  ;;  %v2454_v57 = vadd.f32 %v2453_v15, %v2340_v62  ;;  %v2493_v61 = vmul.f32 %v2340_v62, %v2340_v62  ;;  %2053 = vmatmul.f32.gmra.mxu1 %v926_v1  ;;  %2392 = vmatmul.f32.gmra.mxu0 %v928_v37 }
 0x262   : > { %v2116_v50 = vpop.f32.mrf.mxu2 }
 0x263   : > { %v2524_v18 = vadd.f32 %v2523_v10, %v2493_v61  ;;  %v2117_v12 = vadd.f32 %v2116_v50, %v2004_v31  ;;  %v2229_v5 = vpop.f32.mrf.mxu3 }
 0x265   : > { %v2230_v16 = vadd.f32 %v2229_v5, %v2117_v12 }
 0x266   : > { %v2009_v8 = vpop.f32.mrf.mxu1  ;;  %v2348_v38 = vpop.f32.mrf.mxu0 }
 0x267   : > { %v2343_v11 = vadd.f32 %v2342_v17, %v2230_v16  ;;  %2166 = vmatmul.f32.gmra.mxu2 %v800_v46  ;;  %v2010_v28 = vadd.f32 %v2009_v8, %v3579_v58  ;;  %v803_v46 = vld [vmem:[#allocation2 + $0x170] sm:$0xff] }
 0x268   : > { %2279 = vmatmul.f32.gmra.mxu3 %v864_v39  ;;  %v867_v39 = vld [vmem:[#allocation2 + $0x171] sm:$0xff] }
 0x269   : > { %2424 = vst [vmem:[%s3657_s1 + $0x38] sm:$0xff] %v2343_v11  ;;  %v2455_v20 = vadd.f32 %v2454_v57, %v2343_v11  ;;  %v2494_v1 = vmul.f32 %v2343_v11, %v2343_v11  ;;  %2056 = vmatmul.f32.gmra.mxu1 %v927_v7  ;;  %2395 = vmatmul.f32.gmra.mxu0 %v929_v48  ;;  %v931_v57 = vld [vmem:[#allocation2 + $0x172] sm:$0xff] }
 0x26a   : > { %v2119_v19 = vpop.f32.mrf.mxu2 }
 0x26b   : > { %v2525_v33 = vadd.f32 %v2524_v18, %v2494_v1  ;;  %v2120_v60 = vadd.f32 %v2119_v19, %v2007_v30  ;;  %v2232_v9 = vpop.f32.mrf.mxu3  ;;  %v932_v30 = vld [vmem:[#allocation2 + $0x182] sm:$0xff] }
 0x26d   : > { %v2233_v53 = vadd.f32 %v2232_v9, %v2120_v60  ;;  %v804_v9 = vld [vmem:[#allocation2 + $0x180] sm:$0xff] }
 0x26e   : > { %v2012_v17 = vpop.f32.mrf.mxu1  ;;  %v2351_v15 = vpop.f32.mrf.mxu0 }
 0x26f   : > { %v2346_v45 = vadd.f32 %v2345_v21, %v2233_v53  ;;  %2169 = vmatmul.f32.gmra.mxu2 %v801_v36  ;;  %v2013_v58 = vadd.f32 %v2012_v17, %v3586_v4  ;;  %v868_v53 = vld [vmem:[#allocation2 + $0x181] sm:$0xff] }
 0x270   : > { %2282 = vmatmul.f32.gmra.mxu3 %v865_v22 }
 0x271   : > { %2425 = vst [vmem:[%s3657_s1 + $0x40] sm:$0xff] %v2346_v45  ;;  %v2456_v26 = vadd.f32 %v2455_v20, %v2346_v45  ;;  %v2495_v7 = vmul.f32 %v2346_v45, %v2346_v45  ;;  %2059 = vmatmul.f32.gmra.mxu1 %v928_v37  ;;  %2398 = vmatmul.f32.gmra.mxu0 %v930_v56 }
 0x272   : > { %v2122_v10 = vpop.f32.mrf.mxu2 }
 0x273   : > { %v2526_v49 = vadd.f32 %v2525_v33, %v2495_v7  ;;  %v2123_v14 = vadd.f32 %v2122_v10, %v2010_v28  ;;  %v2235_v47 = vpop.f32.mrf.mxu3 }
 0x275   : > { %v2236_v35 = vadd.f32 %v2235_v47, %v2123_v14  ;;  %v805_v14 = vld [vmem:[#allocation2 + $0x188] sm:$0xff] }
 0x276   : > { %v2015_v62 = vpop.f32.mrf.mxu1  ;;  %v2354_v31 = vpop.f32.mrf.mxu0 }
 0x277   : > { %v2349_v21 = vadd.f32 %v2348_v38, %v2236_v35  ;;  %2172 = vmatmul.f32.gmra.mxu2 %v802_v29  ;;  %v2016_v4 = vadd.f32 %v2015_v62, %v3589_v13  ;;  %v869_v29 = vld [vmem:[#allocation2 + $0x189] sm:$0xff] }
 0x278   : > { %2285 = vmatmul.f32.gmra.mxu3 %v866_v59 }
 0x279   : > { %2426 = vst [vmem:[%s3657_s1 + $0x48] sm:$0xff] %v2349_v21  ;;  %v2457_v61 = vadd.f32 %v2456_v26, %v2349_v21  ;;  %v2496_v37 = vmul.f32 %v2349_v21, %v2349_v21  ;;  %2062 = vmatmul.f32.gmra.mxu1 %v929_v48  ;;  %2401 = vmatmul.f32.gmra.mxu0 %v931_v57  ;;  %v934_v21 = vld [vmem:[#allocation2 + $0x19a] sm:$0xff] }
 0x27a   : > { %v2125_v50 = vpop.f32.mrf.mxu2 }
 0x27b   : > { %v2527_v18 = vadd.f32 %v2526_v49, %v2496_v37  ;;  %v2126_v12 = vadd.f32 %v2125_v50, %v2013_v58  ;;  %v2238_v5 = vpop.f32.mrf.mxu3 }
 0x27d   : > { %v2239_v16 = vadd.f32 %v2238_v5, %v2126_v12  ;;  %v870_v12 = vld [vmem:[#allocation2 + $0x199] sm:$0xff] }
 0x27e   : > { %v2018_v8 = vpop.f32.mrf.mxu1  ;;  %v2357_v38 = vpop.f32.mrf.mxu0 }
 0x27f   : > { %v2352_v11 = vadd.f32 %v2351_v15, %v2239_v16  ;;  %2175 = vmatmul.f32.gmra.mxu2 %v803_v46  ;;  %v933_v15 = vld [vmem:[#allocation2 + $0x18a] sm:$0xff]  ;;  %v2019_v13 = vadd.f32 %v2018_v8, %v3592_v51  ;;  %v2867_v16 = vld [vmem:[#allocation2] sm:$0xff] }
 0x280   : > { %2288 = vmatmul.f32.gmra.mxu3 %v867_v39  ;;  %v935_v8 = vld [vmem:[#allocation2 + $0x1a2] sm:$0xff] }
 0x281   : > { %2427 = vst [vmem:[%s3657_s1 + $0x50] sm:$0xff] %v2352_v11  ;;  %v2458_v20 = vadd.f32 %v2457_v61, %v2352_v11  ;;  %v2497_v48 = vmul.f32 %v2352_v11, %v2352_v11  ;;  %2065 = vmatmul.f32.gmra.mxu1 %v930_v56  ;;  %2404 = vmatmul.f32.gmra.mxu0 %v932_v30 }
 0x282   : > { %v2128_v1 = vpop.f32.mrf.mxu2 }
 0x283   : > { %v2528_v19 = vadd.f32 %v2527_v18, %v2497_v48  ;;  %v2129_v33 = vadd.f32 %v2128_v1, %v2016_v4  ;;  %v2241_v60 = vpop.f32.mrf.mxu3 }
 0x285   : > { %v2242_v36 = vadd.f32 %v2241_v60, %v2129_v33 }
 0x286   : > { %v2021_v22 = vpop.f32.mrf.mxu1  ;;  %v2360_v45 = vpop.f32.mrf.mxu0 }
 0x287   : > { %v2355_v17 = vadd.f32 %v2354_v31, %v2242_v36  ;;  %2178 = vmatmul.f32.gmra.mxu2 %v804_v9  ;;  %v2022_v51 = vadd.f32 %v2021_v22, %v3596_v27 }
 0x288   : > { %2291 = vmatmul.f32.gmra.mxu3 %v868_v53 }
 0x289   : > { %2428 = vst [vmem:[%s3657_s1 + $0x58] sm:$0xff] %v2355_v17  ;;  %v2459_v28 = vadd.f32 %v2458_v20, %v2355_v17  ;;  %v2498_v56 = vmul.f32 %v2355_v17, %v2355_v17  ;;  %2068 = vmatmul.f32.gmra.mxu1 %v931_v57  ;;  %2407 = vmatmul.f32.gmra.mxu0 %v933_v15 }
 0x28a   : > { %v2131_v26 = vpop.f32.mrf.mxu2 }
 0x28b   : > { %v2529_v7 = vadd.f32 %v2528_v19, %v2498_v56  ;;  %v2132_v10 = vadd.f32 %v2131_v26, %v2019_v13  ;;  %v2244_v49 = vpop.f32.mrf.mxu3  ;;  %v871_v19 = vld [vmem:[#allocation2 + $0x1a1] sm:$0xff] }
 0x28d   : > { %v2245_v47 = vadd.f32 %v2244_v49, %v2132_v10 }
 0x28e   : > { %v2024_v35 = vpop.f32.mrf.mxu1  ;;  %v2363_v62 = vpop.f32.mrf.mxu0 }
 0x28f   : > { %v2358_v59 = vadd.f32 %v2357_v38, %v2245_v47  ;;  %2181 = vmatmul.f32.gmra.mxu2 %v805_v14  ;;  %v2025_v27 = vadd.f32 %v2024_v35, %v3600_v32 }
 0x290   : > { %2294 = vmatmul.f32.gmra.mxu3 %v869_v29 }
 0x291   : > { %2429 = vst [vmem:[%s3657_s1 + $0x60] sm:$0xff] %v2358_v59  ;;  %v2460_v31 = vadd.f32 %v2459_v28, %v2358_v59  ;;  %v2499_v57 = vmul.f32 %v2358_v59, %v2358_v59  ;;  %2071 = vmatmul.f32.gmra.mxu1 %v932_v30  ;;  %2410 = vmatmul.f32.gmra.mxu0 %v934_v21 }
 0x292   : > { %v2134_v58 = vpop.f32.mrf.mxu2 }
 0x293   : > { %v2530_v61 = vadd.f32 %v2529_v7, %v2499_v57  ;;  %v2135_v37 = vadd.f32 %v2134_v58, %v2022_v51  ;;  %v2247_v50 = vpop.f32.mrf.mxu3 }
 0x295   : > { %v2248_v18 = vadd.f32 %v2247_v50, %v2135_v37 }
 0x296   : > { %v2027_v5 = vpop.f32.mrf.mxu1  ;;  %v2366_v39 = vpop.f32.mrf.mxu0 }
 0x297   : > { %v2361_v46 = vadd.f32 %v2360_v45, %v2248_v18  ;;  %2184 = vmatmul.f32.gmra.mxu2 %v2867_v16  ;;  %v2028_v32 = vadd.f32 %v2027_v5, %v3603_v44 }
 0x298   : > { %2297 = vmatmul.f32.gmra.mxu3 %v870_v12 }
 0x299   : > { %2430 = vst [vmem:[%s3657_s1 + $0x68] sm:$0xff] %v2361_v46  ;;  %v2461_v11 = vadd.f32 %v2460_v31, %v2361_v46  ;;  %v2500_v38 = vmul.f32 %v2361_v46, %v2361_v46  ;;  %2074 = vmatmul.f32.gmra.mxu1 %v933_v15  ;;  %2413 = vmatmul.f32.gmra.mxu0 %v935_v8 }
 0x29a   : > { %v2137_v30 = vpop.f32.mrf.mxu2 }
 0x29b   : > { %v2531_v4 = vadd.f32 %v2530_v61, %v2500_v38  ;;  %v2138_v20 = vadd.f32 %v2137_v30, %v2025_v27  ;;  %v2250_v48 = vpop.f32.mrf.mxu3 }
 0x29d   : > { %v2251_v1 = vadd.f32 %v2250_v48, %v2138_v20 }
 0x29e   : > { %v2030_v33 = vpop.f32.mrf.mxu1  ;;  %v2369_v9 = vpop.f32.mrf.mxu0 }
 0x29f   : > { %v2364_v60 = vadd.f32 %v2363_v62, %v2251_v1  ;;  %2187 = vmatmul.f32.gmra.mxu2 %v2867_v16  ;;  %v2031_v7 = vadd.f32 %v2030_v33, %v3606_v23 }
 0x2a0   : > { %2300 = vmatmul.f32.gmra.mxu3 %v871_v19 }
 0x2a1   : > { %2431 = vst [vmem:[%s3657_s1 + $0x70] sm:$0xff] %v2364_v60  ;;  %v2462_v36 = vadd.f32 %v2461_v11, %v2364_v60  ;;  %v2501_v53 = vmul.f32 %v2364_v60, %v2364_v60 }
 0x2a2   : > { %v2140_v22 = vpop.f32.mrf.mxu2 }
 0x2a3   : > { %v2532_v17 = vadd.f32 %v2531_v4, %v2501_v53  ;;  %v2141_v45 = vadd.f32 %v2140_v22, %v2028_v32  ;;  %v2253_v15 = vpop.f32.mrf.mxu3 }
 0x2a5   : > { %v2254_v13 = vadd.f32 %v2253_v15, %v2141_v45 }
 0x2a6   : > { %v2033_v28 = vpop.f32.mrf.mxu1  ;;  %v2372_v26 = vpop.f32.mrf.mxu0 }
 0x2a7   : > { %v2367_v56 = vadd.f32 %v2366_v39, %v2254_v13  ;;  %v2034_v51 = vadd.f32 %v2033_v28, %v3609_v43 }
 0x2a9   : > { %2432 = vst [vmem:[%s3657_s1 + $0x78] sm:$0xff] %v2367_v56  ;;  %v2463_v10 = vadd.f32 %v2462_v36, %v2367_v56  ;;  %v2502_v49 = vmul.f32 %v2367_v56, %v2367_v56 }
 0x2aa   : > { %v2143_v14 = vpop.f32.mrf.mxu2 }
 0x2ab   : > { %v2533_v47 = vadd.f32 %v2532_v17, %v2502_v49  ;;  %v2144_v44 = vadd.f32 %v2143_v14, %v2031_v7  ;;  %v2256_v29 = vpop.f32.mrf.mxu3 }
 0x2ad   : > { %v2257_v35 = vadd.f32 %v2256_v29, %v2144_v44 }
 0x2ae   : > { %v2036_v59 = vpop.f32.mrf.mxu1  ;;  %v2375_v21 = vpop.f32.mrf.mxu0 }
 0x2af   : > { %v2370_v62 = vadd.f32 %v2369_v9, %v2257_v35  ;;  %v2037_v46 = vadd.f32 %v2036_v59, %v3612_v0 }
 0x2b1   : > { %2433 = vst [vmem:[%s3657_s1 + $0x80] sm:$0xff] %v2370_v62  ;;  %v2464_v31 = vadd.f32 %v2463_v10, %v2370_v62  ;;  %v2503_v57 = vmul.f32 %v2370_v62, %v2370_v62 }
 0x2b2   : > { %v2146_v58 = vpop.f32.mrf.mxu2 }
 0x2b3   : > { %v2534_v61 = vadd.f32 %v2533_v47, %v2503_v57  ;;  %v2147_v23 = vadd.f32 %v2146_v58, %v2034_v51  ;;  %v2259_v37 = vpop.f32.mrf.mxu3 }
 0x2b5   : > { %v2260_v50 = vadd.f32 %v2259_v37, %v2147_v23 }
 0x2b6   : > { %v2039_v18 = vpop.f32.mrf.mxu1  ;;  %v2378_v5 = vpop.f32.mrf.mxu0 }
 0x2b7   : > { %v2373_v12 = vadd.f32 %v2372_v26, %v2260_v50  ;;  %v2040_v48 = vadd.f32 %v2039_v18, %v3615_v63 }
 0x2b9   : > { %2434 = vst [vmem:[%s3657_s1 + $0x88] sm:$0xff] %v2373_v12  ;;  %v2465_v16 = vadd.f32 %v2464_v31, %v2373_v12  ;;  %v2504_v39 = vmul.f32 %v2373_v12, %v2373_v12 }
 0x2ba   : > { %v2149_v8 = vpop.f32.mrf.mxu2 }
 0x2bb   : > { %v2535_v27 = vadd.f32 %v2534_v61, %v2504_v39  ;;  %v2150_v43 = vadd.f32 %v2149_v8, %v2037_v46  ;;  %v2262_v11 = vpop.f32.mrf.mxu3 }
 0x2bd   : > { %v2263_v38 = vadd.f32 %v2262_v11, %v2150_v43 }
 0x2be   : > { %v2042_v30 = vpop.f32.mrf.mxu1  ;;  %v2381_v20 = vpop.f32.mrf.mxu0 }
 0x2bf   : > { %v2376_v4 = vadd.f32 %v2375_v21, %v2263_v38  ;;  %v2043_v17 = vadd.f32 %v2042_v30, %v3618_v2 }
 0x2c1   : > { %2435 = vst [vmem:[%s3657_s1 + $0x90] sm:$0xff] %v2376_v4  ;;  %v2466_v1 = vadd.f32 %v2465_v16, %v2376_v4  ;;  %v2505_v19 = vmul.f32 %v2376_v4, %v2376_v4 }
 0x2c2   : > { %v2152_v33 = vpop.f32.mrf.mxu2 }
 0x2c3   : > { %v2536_v60 = vadd.f32 %v2535_v27, %v2505_v19  ;;  %v2153_v0 = vadd.f32 %v2152_v33, %v2040_v48  ;;  %v2265_v9 = vpop.f32.mrf.mxu3 }
 0x2c5   : > { %v2266_v32 = vadd.f32 %v2265_v9, %v2153_v0 }
 0x2c6   : > { %v2045_v36 = vpop.f32.mrf.mxu1  ;;  %v2384_v22 = vpop.f32.mrf.mxu0 }
 0x2c7   : > { %v2379_v53 = vadd.f32 %v2378_v5, %v2266_v32  ;;  %v2046_v14 = vadd.f32 %v2045_v36, %v3621_v6 }
 0x2c9   : > { %2436 = vst [vmem:[%s3657_s1 + $0x98] sm:$0xff] %v2379_v53  ;;  %v2467_v45 = vadd.f32 %v2466_v1, %v2379_v53  ;;  %v2506_v15 = vmul.f32 %v2379_v53, %v2379_v53 }
 0x2ca   : > { %v2155_v13 = vpop.f32.mrf.mxu2 }
 0x2cb   : > { %v2537_v28 = vadd.f32 %v2536_v60, %v2506_v15  ;;  %v2156_v63 = vadd.f32 %v2155_v13, %v2043_v17  ;;  %v2268_v56 = vpop.f32.mrf.mxu3 }
 0x2cd   : > { %v2269_v26 = vadd.f32 %v2268_v56, %v2156_v63 }
 0x2ce   : > { %v2048_v7 = vpop.f32.mrf.mxu1  ;;  %v2387_v49 = vpop.f32.mrf.mxu0 }
 0x2cf   : > { %v2382_v10 = vadd.f32 %v2381_v20, %v2269_v26  ;;  %v2049_v57 = vadd.f32 %v2048_v7, %v3624_v41 }
 0x2d1   : > { %2437 = vst [vmem:[%s3657_s1 + $0xa0] sm:$0xff] %v2382_v10  ;;  %v2468_v47 = vadd.f32 %v2467_v45, %v2382_v10  ;;  %v2507_v44 = vmul.f32 %v2382_v10, %v2382_v10 }
 0x2d2   : > { %v2158_v29 = vpop.f32.mrf.mxu2 }
 0x2d3   : > { %v2538_v35 = vadd.f32 %v2537_v28, %v2507_v44  ;;  %v2159_v2 = vadd.f32 %v2158_v29, %v2046_v14  ;;  %v2271_v59 = vpop.f32.mrf.mxu3 }
 0x2d5   : > { %v2272_v62 = vadd.f32 %v2271_v59, %v2159_v2 }
 0x2d6   : > { %v2051_v21 = vpop.f32.mrf.mxu1  ;;  %v2390_v31 = vpop.f32.mrf.mxu0 }
 0x2d7   : > { %v2385_v51 = vadd.f32 %v2384_v22, %v2272_v62  ;;  %v2052_v16 = vadd.f32 %v2051_v21, %v3627_v55 }
 0x2d9   : > { %2438 = vst [vmem:[%s3657_s1 + $0xa8] sm:$0xff] %v2385_v51  ;;  %v2469_v58 = vadd.f32 %v2468_v47, %v2385_v51  ;;  %v2508_v61 = vmul.f32 %v2385_v51, %v2385_v51 }
 0x2da   : > { %v2161_v23 = vpop.f32.mrf.mxu2 }
 0x2db   : > { %v2539_v37 = vadd.f32 %v2538_v35, %v2508_v61  ;;  %v2162_v6 = vadd.f32 %v2161_v23, %v2049_v57  ;;  %v2274_v50 = vpop.f32.mrf.mxu3 }
 0x2dd   : > { %v2275_v18 = vadd.f32 %v2274_v50, %v2162_v6 }
 0x2de   : > { %v2054_v12 = vpop.f32.mrf.mxu1  ;;  %v2393_v46 = vpop.f32.mrf.mxu0 }
 0x2df   : > { %v2388_v5 = vadd.f32 %v2387_v49, %v2275_v18  ;;  %v2055_v48 = vadd.f32 %v2054_v12, %v3630_v24 }
 0x2e1   : > { %2439 = vst [vmem:[%s3657_s1 + $0xb0] sm:$0xff] %v2388_v5  ;;  %v2470_v39 = vadd.f32 %v2469_v58, %v2388_v5  ;;  %v2509_v8 = vmul.f32 %v2388_v5, %v2388_v5 }
 0x2e2   : > { %v2164_v27 = vpop.f32.mrf.mxu2 }
 0x2e3   : > { %v2540_v43 = vadd.f32 %v2539_v37, %v2509_v8  ;;  %v2165_v41 = vadd.f32 %v2164_v27, %v2052_v16  ;;  %v2277_v11 = vpop.f32.mrf.mxu3 }
 0x2e5   : > { %v2278_v38 = vadd.f32 %v2277_v11, %v2165_v41 }
 0x2e6   : > { %v2057_v30 = vpop.f32.mrf.mxu1  ;;  %v2396_v20 = vpop.f32.mrf.mxu0 }
 0x2e7   : > { %v2391_v4 = vadd.f32 %v2390_v31, %v2278_v38  ;;  %v2058_v53 = vadd.f32 %v2057_v30, %v3633_v40 }
 0x2e9   : > { %2440 = vst [vmem:[%s3657_s1 + $0xb8] sm:$0xff] %v2391_v4  ;;  %v2471_v1 = vadd.f32 %v2470_v39, %v2391_v4  ;;  %v2510_v19 = vmul.f32 %v2391_v4, %v2391_v4 }
 0x2ea   : > { %v2167_v33 = vpop.f32.mrf.mxu2 }
 0x2eb   : > { %v2541_v60 = vadd.f32 %v2540_v43, %v2510_v19  ;;  %v2168_v55 = vadd.f32 %v2167_v33, %v2055_v48  ;;  %v2280_v0 = vpop.f32.mrf.mxu3 }
 0x2ed   : > { %v2281_v9 = vadd.f32 %v2280_v0, %v2168_v55 }
 0x2ee   : > { %v2060_v32 = vpop.f32.mrf.mxu1  ;;  %v2399_v15 = vpop.f32.mrf.mxu0 }
 0x2ef   : > { %v2394_v36 = vadd.f32 %v2393_v46, %v2281_v9  ;;  %v2061_v7 = vadd.f32 %v2060_v32, %v3636_v52 }
 0x2f1   : > { %2441 = vst [vmem:[%s3657_s1 + $0xc0] sm:$0xff] %v2394_v36  ;;  %v2472_v22 = vadd.f32 %v2471_v1, %v2394_v36  ;;  %v2511_v17 = vmul.f32 %v2394_v36, %v2394_v36 }
 0x2f2   : > { %v2170_v45 = vpop.f32.mrf.mxu2 }
 0x2f3   : > { %v2542_v13 = vadd.f32 %v2541_v60, %v2511_v17  ;;  %v2171_v24 = vadd.f32 %v2170_v45, %v2058_v53  ;;  %v2283_v28 = vpop.f32.mrf.mxu3 }
 0x2f5   : > { %v2284_v63 = vadd.f32 %v2283_v28, %v2171_v24 }
 0x2f6   : > { %v2063_v56 = vpop.f32.mrf.mxu1  ;;  %v2402_v29 = vpop.f32.mrf.mxu0 }
 0x2f7   : > { %v2397_v26 = vadd.f32 %v2396_v20, %v2284_v63  ;;  %v2064_v62 = vadd.f32 %v2063_v56, %v3639_v25 }
 0x2f9   : > { %2442 = vst [vmem:[%s3657_s1 + $0xc8] sm:$0xff] %v2397_v26  ;;  %v2473_v10 = vadd.f32 %v2472_v22, %v2397_v26  ;;  %v2512_v49 = vmul.f32 %v2397_v26, %v2397_v26 }
 0x2fa   : > { %v2173_v14 = vpop.f32.mrf.mxu2 }
 0x2fb   : > { %v2543_v47 = vadd.f32 %v2542_v13, %v2512_v49  ;;  %v2174_v40 = vadd.f32 %v2173_v14, %v2061_v7  ;;  %v2286_v44 = vpop.f32.mrf.mxu3 }
 0x2fd   : > { %v2287_v35 = vadd.f32 %v2286_v44, %v2174_v40 }
 0x2fe   : > { %v2066_v59 = vpop.f32.mrf.mxu1  ;;  %v2405_v23 = vpop.f32.mrf.mxu0 }
 0x2ff   : > { %v2400_v2 = vadd.f32 %v2399_v15, %v2287_v35  ;;  %v2067_v6 = vadd.f32 %v2066_v59, %v3642_v34 }
 0x301   : > { %2443 = vst [vmem:[%s3657_s1 + $0xd0] sm:$0xff] %v2400_v2  ;;  %v2474_v21 = vadd.f32 %v2473_v10, %v2400_v2  ;;  %v2513_v51 = vmul.f32 %v2400_v2, %v2400_v2 }
 0x302   : > { %v2176_v31 = vpop.f32.mrf.mxu2 }
 0x303   : > { %v2544_v57 = vadd.f32 %v2543_v47, %v2513_v51  ;;  %v2177_v52 = vadd.f32 %v2176_v31, %v2064_v62  ;;  %v2289_v58 = vpop.f32.mrf.mxu3 }
 0x305   : > { %v2290_v61 = vadd.f32 %v2289_v58, %v2177_v52 }
 0x306   : > { %v2069_v5 = vpop.f32.mrf.mxu1  ;;  %v2408_v27 = vpop.f32.mrf.mxu0 }
 0x307   : > { %v2403_v37 = vadd.f32 %v2402_v29, %v2290_v61  ;;  %v2070_v43 = vadd.f32 %v2069_v5, %v3645_v42 }
 0x309   : > { %2444 = vst [vmem:[%s3657_s1 + $0xd8] sm:$0xff] %v2403_v37  ;;  %v2475_v50 = vadd.f32 %v2474_v21, %v2403_v37  ;;  %v2514_v18 = vmul.f32 %v2403_v37, %v2403_v37 }
 0x30a   : > { %v2179_v12 = vpop.f32.mrf.mxu2 }
 0x30b   : > { %v2545_v46 = vadd.f32 %v2544_v57, %v2514_v18  ;;  %v2180_v25 = vadd.f32 %v2179_v12, %v2067_v6  ;;  %v2292_v16 = vpop.f32.mrf.mxu3 }
 0x30d   : > { %v2293_v39 = vadd.f32 %v2292_v16, %v2180_v25 }
 0x30e   : > { %v2072_v20 = vpop.f32.mrf.mxu1  ;;  %v2411_v0 = vpop.f32.mrf.mxu0 }
 0x30f   : > { %v2406_v8 = vadd.f32 %v2405_v23, %v2293_v39  ;;  %v2073_v19 = vadd.f32 %v2072_v20, %v3648_v54 }
 0x311   : > { %2445 = vst [vmem:[%s3657_s1 + $0xe0] sm:$0xff] %v2406_v8  ;;  %v2476_v41 = vadd.f32 %v2475_v50, %v2406_v8  ;;  %v2515_v11 = vmul.f32 %v2406_v8, %v2406_v8 }
 0x312   : > { %v2182_v38 = vpop.f32.mrf.mxu2 }
 0x313   : > { %v2546_v30 = vadd.f32 %v2545_v46, %v2515_v11  ;;  %v2183_v34 = vadd.f32 %v2182_v38, %v2070_v43  ;;  %v2295_v4 = vpop.f32.mrf.mxu3 }
 0x315   : > { %v2296_v48 = vadd.f32 %v2295_v4, %v2183_v34 }
 0x316   : > { %v2075_v53 = vpop.f32.mrf.mxu1  ;;  %v2414_v63 = vpop.f32.mrf.mxu0 }
 0x317   : > { %v2409_v1 = vadd.f32 %v2408_v27, %v2296_v48  ;;  %v2076_v54 = vadd.f32 %v2075_v53, %v3651_v3 }
 0x319   : > { %2446 = vst [vmem:[%s3657_s1 + $0xe8] sm:$0xff] %v2409_v1  ;;  %v2477_v33 = vadd.f32 %v2476_v41, %v2409_v1  ;;  %v2516_v60 = vmul.f32 %v2409_v1, %v2409_v1 }
 0x31a   : > { %v2185_v55 = vpop.f32.mrf.mxu2 }
 0x31b   : > { %v2547_v42 = vadd.f32 %v2546_v30, %v2516_v60  ;;  %v2186_v9 = vadd.f32 %v2185_v55, %v2073_v19  ;;  %v2298_v32 = vpop.f32.mrf.mxu3 }
 0x31d   : > { %v2299_v36 = vadd.f32 %v2298_v32, %v2186_v9 }
 0x31f   : > { %v2412_v22 = vadd.f32 %v2411_v0, %v2299_v36 }
 0x321   : > { %2447 = vst [vmem:[%s3657_s1 + $0xf0] sm:$0xff] %v2412_v22  ;;  %v2478_v17 = vadd.f32 %v2477_v33, %v2412_v22  ;;  %v2517_v45 = vmul.f32 %v2412_v22, %v2412_v22 }
 0x322   : > { %v2188_v15 = vpop.f32.mrf.mxu2 }
 0x323   : > { %v2548_v13 = vadd.f32 %v2547_v42, %v2517_v45  ;;  %v2189_v24 = vadd.f32 %v2188_v15, %v2076_v54  ;;  %v2301_v28 = vpop.f32.mrf.mxu3 }
 0x325   : > { %v2302_v56 = vadd.f32 %v2301_v28, %v2189_v24 }
 0x327   : > { %v2415_v26 = vadd.f32 %v2414_v63, %v2302_v56 }
 0x329   : > { %2448 = vst [vmem:[%s3657_s1 + $0xf8] sm:$0xff] %v2415_v26  ;;  %v2479_v7 = vadd.f32 %v2478_v17, %v2415_v26  ;;  %v2518_v10 = vmul.f32 %v2415_v26, %v2415_v26 }
 0x32a   : > { %2985 = shalt.err (!%p2982_p8)
}
 0x32b   : > { %s3067_s8 = smov 128   ;;  %s3068_s7 = smov 8   ;;  %v2480_v3 = vrot.slane %v2479_v7, 4  ;;  %v2549_v49 = vadd.f32 %v2548_v13, %v2518_v10 }
 0x32c   : > { %2800 = dma.vmem_to_hbm [thread:$0]  (%p3151_p11), %s2578_s24, 4096, %s2580_s25, %s2560_s13, %s3067_s8, %s3067_s8, %s3068_s7  }
 0x32d   : > { %v2481_v14 = vadd.f32 %v2480_v3, %v2479_v7  ;;  %v2550_v47 = vrot.slane %v2549_v49, 4  ;;  %s2732_s12 = sshll.u32 %s3199_s22, 1  ;;  %s2737_s3 = sshll.u32 %s3120_s21, 1 }
 0x32e   : > { %s2592_s28 = scalar_lea.hbm %s3776_s5, %s2737_s3  ;;  %s286_s6 = scalar_lea.vmem [#allocation11], %s2732_s12 }
 0x32f   : > { %v2482_v40 = vrot.slane %v2481_v14, 2  ;;  %v2551_v44 = vadd.f32 %v2550_v47, %v2549_v49  ;;  %s2594_s15 = sshll.u32 %s286_s6, 4  ;;  %s2596_s24 = sshll.u32 %s2592_s28, 4  ;;  %s2595_s15 = int_to_ptr.vmem [resolvable:$true] %s2594_s15  ;;  %s2597_s24 = int_to_ptr.hbm [resolvable:$true] %s2596_s24 }
 0x330   : > { %s2565_s21 = scalar_lea.sflag [#allocation12], %s3199_s22  ;;  %s3000_s25 = sshra.s32 %s2597_s24, 4  ;;  %s3001_s25 = int_to_ptr.hbm [resolvable:$true] %s3000_s25 }
 0x331   : > { %v2483_v29 = vadd.f32 %v2482_v40, %v2481_v14  ;;  %v2552_v35 = vrot.slane %v2551_v44, 2  ;;  %s3002_s13 = scalar_lea.hbm %s3001_s25, 2  ;;  %s3006_s11 = scalar_lea.hbm %s3776_s5, 4 }
 0x332   : > { %p3003_p9 = scmp.ne.s32.totalorder %s3001_s25, %s3002_s13  ;;  %p3007_p2 = scmp.lt.s32.totalorder %s3001_s25, %s3776_s5 }
 0x333   : > { %v2484_v2 = vrot.slane %v2483_v29, 1  ;;  %v2553_v59 = vadd.f32 %v2552_v35, %v2551_v44  ;;  %p3008_p3 = scmp.lt.s32.totalorder %s3006_s11, %s3002_s13 }
 0x334   : > { %p3004_p10 = pnand %p3003_p9, %p3151_p11 }
 0x335   : > { %v2485_v62 = vadd.f32 %v2484_v2, %v2483_v29  ;;  %v2554_v21 = vrot.slane %v2553_v59, 1  ;;  %p3009_p4 = por %p3008_p3, %p3007_p2 }
 0x336   : > { %p3005_p1 = pneg %p3004_p10 }
 0x337   : > { %v2555_v51 = vadd.f32 %v2554_v21, %v2553_v59  ;;  %2557 = vst [vmem:[%s286_s6] sm:$0x1] %v2485_v62 }
 0x338   : > { %p3010_p6 = pnand %p3009_p4, %p3005_p1 }
 0x339   : > { %2558 = vst [vmem:[%s286_s6 + $0x1] sm:$0x1] %v2555_v51 }
 0x33a   : > { %3013 = shalt.err (!%p3010_p6)
}
 0x33b   : > { %2801 = dma.vmem_to_hbm [thread:$0]  (%p3151_p11), %s2595_s15, 32, %s2597_s24, %s2565_s21  }
 0x33c PF: > { %s2608_s22 = sand.u32 1, %s3048_s18   ;;  %p3788_p13 = scmp.ge.s32.totalorder %s3060_s20, 2 }
 0x33d   : > { %s2609_s17 = scalar_lea.sflag [#allocation6], %s2608_s22 }
 0x33e   : > { %p2816_p0 = pnand %p3788_p13, %p3155_p12 }
 0x340   : > { %p2817_p7 = pneg %p2816_p0 }
 0x342   : > { %3039 = dma.done.wait (%p2817_p7), %s2609_s17, 4096  }
 0x343   : > { %3041 = vsyncadd (%p2817_p7), %s2609_s17, 4294963200  ;;  %s2619_s10 = scalar_lea.sflag [#allocation12], %s2608_s22 }
 0x344   : > { %3043 = dma.done.wait (%p2817_p7), %s2619_s10, 32  }
 0x345   : > { %3045 = vsyncadd (%p2817_p7), %s2619_s10, 4294967264  ;;  %s3789_s29 = sld [smem:[#allocation17_spill]]  ;;  %p23_p11 = scmp.ge.s32.totalorder %s3124_s23, 4  }
 0x346   : > { %s3790_s18 = smov %s3052_s19  ;;  %s3791_s19 = smov %s3056_s2 }
 0x347   : > { %s3793_s20 = smov %s3124_s23  ;;  %25 = sbr.rel (!%p23_p11) target bundleno = 11 (0xb), region = 109 }
 0x34b   : > { %s3792_s2 = smov %s3789_s29 }
 0x34c   :  { %2625 = vsyncpa [#allocation5], 1 }
 0x34d   :  { %2627 = vsyncpa [#allocation5 + $0x1], 1 }
 0x34e   :  { %2628 = vsyncpa [#allocation8], 1 }
 0x34f   :  { %2629 = vsyncpa [#allocation6], 1 }
 0x350   :  { %2631 = vsyncpa [#allocation6 + $0x1], 1 }
 0x351   :  { %2632 = vsyncpa [#allocation12], 1 }
 0x352   :  { %2634 = vsyncpa [#allocation12 + $0x1], 1 }

</bundles_post_ra>
